<compile_context>
chip_gen: v7x
topology: tpu7x:2x2x1
jax: 0.10.0
libtpu: 0.0.40
codegen_flags: <defaults>
</compile_context>

<pallas_src>
import functools

import jax
import jax.numpy as jnp
import numpy as np
from jax import lax
from jax.experimental import pallas as pl
from jax.experimental.pallas import tpu as pltpu


def bottleneck_kernel(x_ref, w1_ref, s1_ref, b1_ref,
                      w2_ref, s2_ref, b2_ref,
                      w3_ref, s3_ref, b3_ref,
                      out_ref, pad_ref, *, H, W, P, Ht):
    """Grid = (image n, row-tile r).  Stage 1 runs once per image (r == 0) and
    fills a halo-padded scratch; stages 2/3 process Ht output rows per step.

    x_ref   : (1, H*W, Cin)     bf16  flattened NHWC input image (Cin == 4*P)
    w1_ref  : (Cin, P)          bf16  1x1 conv1 weight
    w2_ref  : (3, 3P, P)        bf16  3x3 conv2 weight, per-kh im2col-packed (kw,Ci)
    w3_ref  : (P, Cout)         bf16  1x1 conv3 weight (Cout == 4*P == Cin)
    s*/b*   : (1, C)            f32   folded BatchNorm scale / shift
    out_ref : (1, Ht*W, Cout)   bf16  output rows of this tile
    pad_ref : (H+2, W+32, P)    bf16  stage-1 activations; interior at rows
              [1, H+1) and cols [16, 16+W) (bf16 packed-sublane aligned), 3x3
              taps read at column offsets 15/16/17.
    """
    f32 = jnp.float32
    bf16 = jnp.bfloat16
    Wp = W + 32
    HtW = Ht * W
    Cin = x_ref.shape[-1]
    r = pl.program_id(1)

    # ---- Stage 1 (once per image): conv1 (1x1) + bn1 + relu -> scratch -----
    @pl.when(r == 0)
    def _stage1():
        # Zero only the halo the 3x3 taps actually read: top/bottom rows plus
        # the two aligned 16-wide column slabs (cover tap cols 15 and W+16).
        pad_ref[0, :, :] = jnp.zeros((Wp, P), bf16)
        pad_ref[H + 1, :, :] = jnp.zeros((Wp, P), bf16)
        pad_ref[:, 0:16, :] = jnp.zeros((H + 2, 16, P), bf16)
        pad_ref[:, W + 16:Wp, :] = jnp.zeros((H + 2, 16, P), bf16)

        # One (HW, Cin) x (Cin, P) MXU matmul over the whole image.
        y1 = jnp.dot(x_ref[0], w1_ref[...], preferred_element_type=f32)
        y1 = jnp.maximum(y1 * s1_ref[...] + b1_ref[...], 0.0)
        # Interior starts at column 16 -> unmasked bf16 packed-sublane store.
        pad_ref[1:H + 1, 16:16 + W, :] = y1.astype(bf16).reshape(H, W, P)

    # ---- Stage 2 (this row tile): conv2 (3x3, pad=1) + bn2 + relu ----------
    # im2col along kw: the three taps of a kh row are concatenated on lanes so
    # each dot contracts K = 3P (3 matmuls instead of 9 with K = P).
    row0 = pl.multiple_of(r * Ht, Ht)           # first output row of this tile
    acc = None
    for kh in range(3):
        taps = [pad_ref[pl.ds(row0 + kh, Ht), 15 + kw:15 + kw + W, :]
                for kw in range(3)]
        patch = jnp.concatenate(taps, axis=-1).reshape(HtW, 3 * P)
        d = jnp.dot(patch, w2_ref[kh], preferred_element_type=f32)
        acc = d if acc is None else acc + d
    y2 = jnp.maximum(acc * s2_ref[...] + b2_ref[...], 0.0).astype(bf16)

    # ---- Stage 3 (this row tile): conv3 (1x1) + bn3 + residual + relu ------
    y3 = jnp.dot(y2, w3_ref[...], preferred_element_type=f32)
    # Re-read only this tile's residual rows from the VMEM-resident input
    # block (instead of holding the full image live across all three stages);
    # the add stays in f32 for accuracy.
    tile0 = pl.multiple_of(r * HtW, HtW)
    res = x_ref[:, pl.ds(tile0, HtW), :].reshape(HtW, Cin).astype(f32)
    y3 = jnp.maximum(y3 * s3_ref[...] + b3_ref[...] + res, 0.0)
    out_ref[0] = y3.astype(out_ref.dtype)


def _vmem_limit_bytes():
    """Generation-aware VMEM cap (~3/4 of physical): <=48 MiB on v7x (64 MiB
    physical), up to 96 MiB on v5e/v6e (128 MiB).  The test-shape blocks need
    well under 1 MiB; the headroom only matters when scaling block sizes."""
    cap = 64 * 1024 * 1024
    try:
        cap = int(pltpu.get_tpu_info().vmem_capacity_bytes)
    except Exception:
        pass
    return int(min(max(cap * 3 // 4, 32 * 1024 * 1024), 100 * 1024 * 1024))


def bottleneck_forward(x_nchw, params, *, row_tile=8):
    """Applies the Bottleneck block.  Input is NCHW f32; output is NCHW bf16
    (bf16 kernel I/O — cast downstream if f32 is required)."""
    (w1, s1, b1, w2, s2, b2, w3, s3, b3) = params
    N, Cin, H, W = x_nchw.shape
    P = w1.shape[1]
    Cout = w3.shape[1]
    HW = H * W
    assert Cout == Cin, "downsample=None requires inplanes == 4*planes"
    assert W % 16 == 0, "bf16 packed-sublane alignment of the conv2 scratch"
    Ht = min(row_tile, H)
    assert H % Ht == 0, "row tile must divide H"
    R = H // Ht

    # NCHW -> NHWC -> (N, H*W, C), cast to bf16 (memory-bound: halves input DMA).
    # TODO(synk): if the surrounding model stays NHWC/bf16 these transposes/casts vanish.
    x = jnp.transpose(x_nchw, (0, 2, 3, 1)).reshape(N, HW, Cin).astype(jnp.bfloat16)

    w1b = w1.astype(jnp.bfloat16)
    # (kh, kw, Ci, Co) -> (3, 3*Ci, Co): taps packed along the contraction dim,
    # matching the kernel's kw-major lane concatenation.
    w2b = w2.reshape(3, 3 * P, P).astype(jnp.bfloat16)
    w3b = w3.astype(jnp.bfloat16)

    kernel = functools.partial(bottleneck_kernel, H=H, W=W, P=P, Ht=Ht)

    grid_spec = pltpu.PrefetchScalarGridSpec(
        num_scalar_prefetch=0,
        grid=(N, R),                       # images (parallel) x row tiles (arbitrary)
        in_specs=[
            # Full image; index depends only on n, so it is DMA'd once per image.
            pl.BlockSpec((1, HW, Cin), lambda n, r: (n, 0, 0)),
            pl.BlockSpec((Cin, P), lambda n, r: (0, 0)),
            pl.BlockSpec((1, P), lambda n, r: (0, 0)),
            pl.BlockSpec((1, P), lambda n, r: (0, 0)),
            pl.BlockSpec((3, 3 * P, P), lambda n, r: (0, 0, 0)),
            pl.BlockSpec((1, P), lambda n, r: (0, 0)),
            pl.BlockSpec((1, P), lambda n, r: (0, 0)),
            pl.BlockSpec((P, Cout), lambda n, r: (0, 0)),
            pl.BlockSpec((1, Cout), lambda n, r: (0, 0)),
            pl.BlockSpec((1, Cout), lambda n, r: (0, 0)),
        ],
        out_specs=pl.BlockSpec((1, Ht * W, Cout), lambda n, r: (n, r, 0)),
        scratch_shapes=[pltpu.VMEM((H + 2, W + 32, P), jnp.bfloat16)],
    )

    out = pl.pallas_call(
        kernel,
        out_shape=jax.ShapeDtypeStruct((N, HW, Cout), jnp.bfloat16),
        grid_spec=grid_spec,
        compiler_params=pltpu.CompilerParams(
            dimension_semantics=("parallel", "arbitrary"),
            vmem_limit_bytes=_vmem_limit_bytes(),
        ),
    )(x, w1b, s1, b1, w2b, s2, b2, w3b, s3, b3)

    return jnp.transpose(out.reshape(N, H, W, Cout), (0, 3, 1, 2))


def bottleneck_reference(x_nchw, params):
    """Pure-JAX reference (lax convs) with the same bf16 quantization points."""
    (w1, s1, b1, w2, s2, b2, w3, s3, b3) = params
    bf16 = jnp.bfloat16
    # Match the kernel's bf16 input quantization (also used for the residual).
    x = jnp.transpose(x_nchw, (0, 2, 3, 1)).astype(bf16).astype(jnp.float32)
    dn = ("NHWC", "HWIO", "NHWC")

    def conv(a, w):
        return lax.conv_general_dilated(
            a.astype(bf16), w.astype(bf16), (1, 1), "SAME",
            dimension_numbers=dn, preferred_element_type=jnp.float32)

    y = conv(x, w1[None, None])
    y = jnp.maximum(y * s1 + b1, 0.0)
    y = conv(y, w2)
    y = jnp.maximum(y * s2 + b2, 0.0)
    y = conv(y, w3[None, None])
    y = jnp.maximum(y * s3 + b3 + x, 0.0)
    return jnp.transpose(y, (0, 3, 1, 2))


def make_params(key, inplanes, planes):
    """Deterministic synthetic parameters; BN folded (inference mode)."""
    eps = 1e-5
    cout = planes * 4
    ks = jax.random.split(key, 6)

    def folded_bn(k, c):
        kg, kb, km, kv = jax.random.split(k, 4)
        gamma = 1.0 + 0.1 * jax.random.normal(kg, (c,), jnp.float32)
        beta = 0.1 * jax.random.normal(kb, (c,), jnp.float32)
        mean = 0.05 * jax.random.normal(km, (c,), jnp.float32)
        var = jax.random.uniform(kv, (c,), jnp.float32, 0.5, 1.5)
        scale = gamma / jnp.sqrt(var + eps)
        shift = beta - mean * scale
        return scale[None, :], shift[None, :]

    w1 = 0.2 * jax.random.normal(ks[0], (inplanes, planes), jnp.float32)
    w2 = 0.2 * jax.random.normal(ks[1], (3, 3, planes, planes), jnp.float32)
    w3 = 0.2 * jax.random.normal(ks[2], (planes, cout), jnp.float32)
    s1, b1 = folded_bn(ks[3], planes)
    s2, b2 = folded_bn(ks[4], planes)
    s3, b3 = folded_bn(ks[5], cout)
    return (w1, s1, b1, w2, s2, b2, w3, s3, b3)


if __name__ == "__main__":
    # TODO(synk): training-mode BatchNorm (batch statistics) is not implemented;
    # BN is folded into per-channel scale/shift (inference semantics).
    # planes=32 -> inplanes=Cout=128 so residual/input/output are lane-dense.
    inplanes, planes = 128, 32
    N, H, W = 2, 16, 16

    key = jax.random.PRNGKey(0)
    kx, kp = jax.random.split(key)
    x = jax.random.normal(kx, (N, inplanes, H, W), jnp.float32)     # NCHW input
    params = make_params(kp, inplanes, planes)

    out = jax.block_until_ready(bottleneck_forward(x, params))
    ref = jax.block_until_ready(bottleneck_reference(x, params))

    out_f32 = np.asarray(out.astype(jnp.float32))
    ref_f32 = np.asarray(ref.astype(jnp.bfloat16).astype(jnp.float32))
    np.testing.assert_allclose(out_f32, ref_f32, rtol=2e-2, atol=2e-2)
    print("KERNEL_OK")
</pallas_src>

<mosaic_0001>
module attributes {stable_mosaic.version = 11 : i64} {
  func.func @bottleneck_kernel(%arg0: i32, %arg1: i32, %arg2: memref<1x256x128xbf16, #tpu.memory_space<vmem>>, %arg3: memref<128x32xbf16, #tpu.memory_space<vmem>>, %arg4: memref<1x32xf32, #tpu.memory_space<vmem>>, %arg5: memref<1x32xf32, #tpu.memory_space<vmem>>, %arg6: memref<3x96x32xbf16, #tpu.memory_space<vmem>>, %arg7: memref<1x32xf32, #tpu.memory_space<vmem>>, %arg8: memref<1x32xf32, #tpu.memory_space<vmem>>, %arg9: memref<32x128xbf16, #tpu.memory_space<vmem>>, %arg10: memref<1x128xf32, #tpu.memory_space<vmem>>, %arg11: memref<1x128xf32, #tpu.memory_space<vmem>>, %arg12: memref<1x128x128xbf16, #tpu.memory_space<vmem>>, %arg13: memref<18x48x32xbf16, #tpu.memory_space<vmem>>) attributes {dimension_semantics = [#tpu.dimension_semantics<parallel>, #tpu.dimension_semantics<arbitrary>], iteration_bounds = array<i64: 2, 2>, scalar_prefetch = 0 : i64, scratch_operands = 1 : i64, tpu.core_type = #tpu.core_type<tc>, window_params = [{transform_indices = @transform_0, window_bounds = array<i64: 1, 256, 128>}, {pipeline_mode = #tpu.pipeline_mode<synchronous>, transform_indices = @transform_1, window_bounds = array<i64: 128, 32>}, {pipeline_mode = #tpu.pipeline_mode<synchronous>, transform_indices = @transform_2, window_bounds = array<i64: 1, 32>}, {pipeline_mode = #tpu.pipeline_mode<synchronous>, transform_indices = @transform_3, window_bounds = array<i64: 1, 32>}, {pipeline_mode = #tpu.pipeline_mode<synchronous>, transform_indices = @transform_4, window_bounds = array<i64: 3, 96, 32>}, {pipeline_mode = #tpu.pipeline_mode<synchronous>, transform_indices = @transform_5, window_bounds = array<i64: 1, 32>}, {pipeline_mode = #tpu.pipeline_mode<synchronous>, transform_indices = @transform_6, window_bounds = array<i64: 1, 32>}, {pipeline_mode = #tpu.pipeline_mode<synchronous>, transform_indices = @transform_7, window_bounds = array<i64: 32, 128>}, {pipeline_mode = #tpu.pipeline_mode<synchronous>, transform_indices = @transform_8, window_bounds = array<i64: 1, 128>}, {pipeline_mode = #tpu.pipeline_mode<synchronous>, transform_indices = @transform_9, window_bounds = array<i64: 1, 128>}, {transform_indices = @transform_10, window_bounds = array<i64: 1, 128, 128>}]} {
    %c0_i32 = arith.constant 0 : i32
    %0 = arith.cmpi eq, %arg1, %c0_i32 : i32
    %1 = arith.extui %0 : i1 to i32
    %c0_i32_0 = arith.constant 0 : i32
    %2 = arith.cmpi ne, %1, %c0_i32_0 : i32
    scf.if %2 {
      %cst_49 = arith.constant 0.000000e+00 : bf16
      %79 = vector.broadcast %cst_49 : bf16 to vector<48x32xbf16>
      %c0_50 = arith.constant 0 : index
      %c0_51 = arith.constant 0 : index
      %c0_52 = arith.constant 0 : index
      %80 = vector.load %arg13[%c0_50, %c0_51, %c0_52] : memref<18x48x32xbf16, #tpu.memory_space<vmem>>, vector<1x48x32xbf16>
      %81 = vector.shape_cast %80 : vector<1x48x32xbf16> to vector<48x32xbf16>
      %82 = vector.shape_cast %79 : vector<48x32xbf16> to vector<1x48x32xbf16>
      tpu.vector_store %arg13[%c0_50, %c0_51, %c0_52], %82 {strides = array<i32>} : memref<18x48x32xbf16, #tpu.memory_space<vmem>>, vector<1x48x32xbf16>,
      %cst_53 = arith.constant 0.000000e+00 : bf16
      %83 = vector.broadcast %cst_53 : bf16 to vector<48x32xbf16>
      %c17_54 = arith.constant 17 : index
      %c0_55 = arith.constant 0 : index
      %c0_56 = arith.constant 0 : index
      %84 = vector.load %arg13[%c17_54, %c0_55, %c0_56] : memref<18x48x32xbf16, #tpu.memory_space<vmem>>, vector<1x48x32xbf16>
      %85 = vector.shape_cast %84 : vector<1x48x32xbf16> to vector<48x32xbf16>
      %86 = vector.shape_cast %83 : vector<48x32xbf16> to vector<1x48x32xbf16>
      tpu.vector_store %arg13[%c17_54, %c0_55, %c0_56], %86 {strides = array<i32>} : memref<18x48x32xbf16, #tpu.memory_space<vmem>>, vector<1x48x32xbf16>,
      %cst_57 = arith.constant 0.000000e+00 : bf16
      %87 = vector.broadcast %cst_57 : bf16 to vector<18x16x32xbf16>
      %c0_58 = arith.constant 0 : index
      %c0_59 = arith.constant 0 : index
      %c0_60 = arith.constant 0 : index
      %88 = vector.load %arg13[%c0_58, %c0_59, %c0_60] : memref<18x48x32xbf16, #tpu.memory_space<vmem>>, vector<18x16x32xbf16>
      tpu.vector_store %arg13[%c0_58, %c0_59, %c0_60], %87 {strides = array<i32>} : memref<18x48x32xbf16, #tpu.memory_space<vmem>>, vector<18x16x32xbf16>,
      %cst_61 = arith.constant 0.000000e+00 : bf16
      %89 = vector.broadcast %cst_61 : bf16 to vector<18x16x32xbf16>
      %c0_62 = arith.constant 0 : index
      %c32 = arith.constant 32 : index
      %c0_63 = arith.constant 0 : index
      %90 = vector.load %arg13[%c0_62, %c32, %c0_63] : memref<18x48x32xbf16, #tpu.memory_space<vmem>>, vector<18x16x32xbf16>
      tpu.vector_store %arg13[%c0_62, %c32, %c0_63], %89 {strides = array<i32>} : memref<18x48x32xbf16, #tpu.memory_space<vmem>>, vector<18x16x32xbf16>,
      %c0_64 = arith.constant 0 : index
      %c0_65 = arith.constant 0 : index
      %c0_66 = arith.constant 0 : index
      %91 = vector.load %arg2[%c0_64, %c0_65, %c0_66] : memref<1x256x128xbf16, #tpu.memory_space<vmem>>, vector<1x256x128xbf16>
      %92 = vector.shape_cast %91 : vector<1x256x128xbf16> to vector<256x128xbf16>
      %c0_67 = arith.constant 0 : index
      %c0_68 = arith.constant 0 : index
      %93 = vector.load %arg3[%c0_67, %c0_68] : memref<128x32xbf16, #tpu.memory_space<vmem>>, vector<128x32xbf16>
      %cst_69 = arith.constant dense<0.000000e+00> : vector<256x32xf32>
      %94 = tpu.matmul %92, %93, %cst_69 {dimension_numbers = #tpu.dot_dimension_numbers<[1], [0], [0], [1], [0, 0, 1, 1], [], []>} : vector<256x128xbf16>, vector<128x32xbf16>, vector<256x32xf32> -> vector<256x32xf32>
      %c0_70 = arith.constant 0 : index
      %c0_71 = arith.constant 0 : index
      %95 = vector.load %arg4[%c0_70, %c0_71] : memref<1x32xf32, #tpu.memory_space<vmem>>, vector<1x32xf32>
      %96 = vector.broadcast %95 : vector<1x32xf32> to vector<256x32xf32>
      %97 = arith.mulf %94, %96 : vector<256x32xf32>
      %c0_72 = arith.constant 0 : index
      %c0_73 = arith.constant 0 : index
      %98 = vector.load %arg5[%c0_72, %c0_73] : memref<1x32xf32, #tpu.memory_space<vmem>>, vector<1x32xf32>
      %99 = vector.broadcast %98 : vector<1x32xf32> to vector<256x32xf32>
      %100 = arith.addf %97, %99 : vector<256x32xf32>
      %cst_74 = arith.constant 0.000000e+00 : f32
      %101 = vector.broadcast %cst_74 : f32 to vector<256x32xf32>
      %102 = arith.maximumf %100, %101 : vector<256x32xf32>
      %103 = arith.truncf %102 : vector<256x32xf32> to vector<256x32xbf16>
      %104 = vector.shape_cast %103 : vector<256x32xbf16> to vector<16x16x32xbf16>
      %c1_75 = arith.constant 1 : index
      %c16_76 = arith.constant 16 : index
      %c0_77 = arith.constant 0 : index
      %105 = vector.load %arg13[%c1_75, %c16_76, %c0_77] : memref<18x48x32xbf16, #tpu.memory_space<vmem>>, vector<16x16x32xbf16>
      tpu.vector_store %arg13[%c1_75, %c16_76, %c0_77], %104 {strides = array<i32>} : memref<18x48x32xbf16, #tpu.memory_space<vmem>>, vector<16x16x32xbf16>,
    } else {
    }
    %c8_i32 = arith.constant 8 : i32
    %3 = arith.muli %arg1, %c8_i32 : i32
    %4 = tpu.assume_multiple %3, 8 : i32
    %c0_i32_1 = arith.constant 0 : i32
    %5 = arith.addi %4, %c0_i32_1 : i32
    %6 = arith.index_cast %5 : i32 to index
    %c15 = arith.constant 15 : index
    %c0 = arith.constant 0 : index
    %7 = vector.load %arg13[%6, %c15, %c0] : memref<18x48x32xbf16, #tpu.memory_space<vmem>>, vector<8x16x32xbf16>
    %c0_i32_2 = arith.constant 0 : i32
    %8 = arith.addi %4, %c0_i32_2 : i32
    %9 = arith.index_cast %8 : i32 to index
    %c16 = arith.constant 16 : index
    %c0_3 = arith.constant 0 : index
    %10 = vector.load %arg13[%9, %c16, %c0_3] : memref<18x48x32xbf16, #tpu.memory_space<vmem>>, vector<8x16x32xbf16>
    %c0_i32_4 = arith.constant 0 : i32
    %11 = arith.addi %4, %c0_i32_4 : i32
    %12 = arith.index_cast %11 : i32 to index
    %c17 = arith.constant 17 : index
    %c0_5 = arith.constant 0 : index
    %13 = vector.load %arg13[%12, %c17, %c0_5] : memref<18x48x32xbf16, #tpu.memory_space<vmem>>, vector<8x16x32xbf16>
    %14 = tpu.concatenate %7, %10, %13 in 2 : vector<8x16x32xbf16>, vector<8x16x32xbf16>, vector<8x16x32xbf16> -> vector<8x16x96xbf16>
    %15 = vector.shape_cast %14 : vector<8x16x96xbf16> to vector<128x96xbf16>
    %c0_6 = arith.constant 0 : index
    %c0_7 = arith.constant 0 : index
    %c0_8 = arith.constant 0 : index
    %16 = vector.load %arg6[%c0_6, %c0_7, %c0_8] : memref<3x96x32xbf16, #tpu.memory_space<vmem>>, vector<1x96x32xbf16>
    %17 = vector.shape_cast %16 : vector<1x96x32xbf16> to vector<96x32xbf16>
    %cst = arith.constant dense<0.000000e+00> : vector<128x32xf32>
    %18 = tpu.matmul %15, %17, %cst {dimension_numbers = #tpu.dot_dimension_numbers<[1], [0], [0], [1], [0, 0, 1, 1], [], []>} : vector<128x96xbf16>, vector<96x32xbf16>, vector<128x32xf32> -> vector<128x32xf32>
    %c1_i32 = arith.constant 1 : i32
    %19 = arith.addi %4, %c1_i32 : i32
    %20 = arith.index_cast %19 : i32 to index
    %c15_9 = arith.constant 15 : index
    %c0_10 = arith.constant 0 : index
    %21 = vector.load %arg13[%20, %c15_9, %c0_10] : memref<18x48x32xbf16, #tpu.memory_space<vmem>>, vector<8x16x32xbf16>
    %c1_i32_11 = arith.constant 1 : i32
    %22 = arith.addi %4, %c1_i32_11 : i32
    %23 = arith.index_cast %22 : i32 to index
    %c16_12 = arith.constant 16 : index
    %c0_13 = arith.constant 0 : index
    %24 = vector.load %arg13[%23, %c16_12, %c0_13] : memref<18x48x32xbf16, #tpu.memory_space<vmem>>, vector<8x16x32xbf16>
    %c1_i32_14 = arith.constant 1 : i32
    %25 = arith.addi %4, %c1_i32_14 : i32
    %26 = arith.index_cast %25 : i32 to index
    %c17_15 = arith.constant 17 : index
    %c0_16 = arith.constant 0 : index
    %27 = vector.load %arg13[%26, %c17_15, %c0_16] : memref<18x48x32xbf16, #tpu.memory_space<vmem>>, vector<8x16x32xbf16>
    %28 = tpu.concatenate %21, %24, %27 in 2 : vector<8x16x32xbf16>, vector<8x16x32xbf16>, vector<8x16x32xbf16> -> vector<8x16x96xbf16>
    %29 = vector.shape_cast %28 : vector<8x16x96xbf16> to vector<128x96xbf16>
    %c1 = arith.constant 1 : index
    %c0_17 = arith.constant 0 : index
    %c0_18 = arith.constant 0 : index
    %30 = vector.load %arg6[%c1, %c0_17, %c0_18] : memref<3x96x32xbf16, #tpu.memory_space<vmem>>, vector<1x96x32xbf16>
    %31 = vector.shape_cast %30 : vector<1x96x32xbf16> to vector<96x32xbf16>
    %cst_19 = arith.constant dense<0.000000e+00> : vector<128x32xf32>
    %32 = tpu.matmul %29, %31, %cst_19 {dimension_numbers = #tpu.dot_dimension_numbers<[1], [0], [0], [1], [0, 0, 1, 1], [], []>} : vector<128x96xbf16>, vector<96x32xbf16>, vector<128x32xf32> -> vector<128x32xf32>
    %33 = arith.addf %18, %32 : vector<128x32xf32>
    %c2_i32 = arith.constant 2 : i32
    %34 = arith.addi %4, %c2_i32 : i32
    %35 = arith.index_cast %34 : i32 to index
    %c15_20 = arith.constant 15 : index
    %c0_21 = arith.constant 0 : index
    %36 = vector.load %arg13[%35, %c15_20, %c0_21] : memref<18x48x32xbf16, #tpu.memory_space<vmem>>, vector<8x16x32xbf16>
    %c2_i32_22 = arith.constant 2 : i32
    %37 = arith.addi %4, %c2_i32_22 : i32
    %38 = arith.index_cast %37 : i32 to index
    %c16_23 = arith.constant 16 : index
    %c0_24 = arith.constant 0 : index
    %39 = vector.load %arg13[%38, %c16_23, %c0_24] : memref<18x48x32xbf16, #tpu.memory_space<vmem>>, vector<8x16x32xbf16>
    %c2_i32_25 = arith.constant 2 : i32
    %40 = arith.addi %4, %c2_i32_25 : i32
    %41 = arith.index_cast %40 : i32 to index
    %c17_26 = arith.constant 17 : index
    %c0_27 = arith.constant 0 : index
    %42 = vector.load %arg13[%41, %c17_26, %c0_27] : memref<18x48x32xbf16, #tpu.memory_space<vmem>>, vector<8x16x32xbf16>
    %43 = tpu.concatenate %36, %39, %42 in 2 : vector<8x16x32xbf16>, vector<8x16x32xbf16>, vector<8x16x32xbf16> -> vector<8x16x96xbf16>
    %44 = vector.shape_cast %43 : vector<8x16x96xbf16> to vector<128x96xbf16>
    %c2 = arith.constant 2 : index
    %c0_28 = arith.constant 0 : index
    %c0_29 = arith.constant 0 : index
    %45 = vector.load %arg6[%c2, %c0_28, %c0_29] : memref<3x96x32xbf16, #tpu.memory_space<vmem>>, vector<1x96x32xbf16>
    %46 = vector.shape_cast %45 : vector<1x96x32xbf16> to vector<96x32xbf16>
    %cst_30 = arith.constant dense<0.000000e+00> : vector<128x32xf32>
    %47 = tpu.matmul %44, %46, %cst_30 {dimension_numbers = #tpu.dot_dimension_numbers<[1], [0], [0], [1], [0, 0, 1, 1], [], []>} : vector<128x96xbf16>, vector<96x32xbf16>, vector<128x32xf32> -> vector<128x32xf32>
    %48 = arith.addf %33, %47 : vector<128x32xf32>
    %c0_31 = arith.constant 0 : index
    %c0_32 = arith.constant 0 : index
    %49 = vector.load %arg7[%c0_31, %c0_32] : memref<1x32xf32, #tpu.memory_space<vmem>>, vector<1x32xf32>
    %50 = vector.broadcast %49 : vector<1x32xf32> to vector<128x32xf32>
    %51 = arith.mulf %48, %50 : vector<128x32xf32>
    %c0_33 = arith.constant 0 : index
    %c0_34 = arith.constant 0 : index
    %52 = vector.load %arg8[%c0_33, %c0_34] : memref<1x32xf32, #tpu.memory_space<vmem>>, vector<1x32xf32>
    %53 = vector.broadcast %52 : vector<1x32xf32> to vector<128x32xf32>
    %54 = arith.addf %51, %53 : vector<128x32xf32>
    %cst_35 = arith.constant 0.000000e+00 : f32
    %55 = vector.broadcast %cst_35 : f32 to vector<128x32xf32>
    %56 = arith.maximumf %54, %55 : vector<128x32xf32>
    %57 = arith.truncf %56 : vector<128x32xf32> to vector<128x32xbf16>
    %c0_36 = arith.constant 0 : index
    %c0_37 = arith.constant 0 : index
    %58 = vector.load %arg9[%c0_36, %c0_37] : memref<32x128xbf16, #tpu.memory_space<vmem>>, vector<32x128xbf16>
    %cst_38 = arith.constant dense<0.000000e+00> : vector<128x128xf32>
    %59 = tpu.matmul %57, %58, %cst_38 {dimension_numbers = #tpu.dot_dimension_numbers<[1], [0], [0], [1], [0, 0, 1, 1], [], []>} : vector<128x32xbf16>, vector<32x128xbf16>, vector<128x128xf32> -> vector<128x128xf32>
    %c128_i32 = arith.constant 128 : i32
    %60 = arith.muli %arg1, %c128_i32 : i32
    %61 = tpu.assume_multiple %60, 128 : i32
    %c0_39 = arith.constant 0 : index
    %62 = arith.index_cast %61 : i32 to index
    %c0_40 = arith.constant 0 : index
    %63 = vector.load %arg2[%c0_39, %62, %c0_40] : memref<1x256x128xbf16, #tpu.memory_space<vmem>>, vector<1x128x128xbf16>
    %64 = vector.shape_cast %63 : vector<1x128x128xbf16> to vector<128x128xbf16>
    %65 = arith.extf %64 : vector<128x128xbf16> to vector<128x128xf32>
    %c0_41 = arith.constant 0 : index
    %c0_42 = arith.constant 0 : index
    %66 = vector.load %arg10[%c0_41, %c0_42] : memref<1x128xf32, #tpu.memory_space<vmem>>, vector<1x128xf32>
    %67 = vector.broadcast %66 : vector<1x128xf32> to vector<128x128xf32>
    %68 = arith.mulf %59, %67 : vector<128x128xf32>
    %c0_43 = arith.constant 0 : index
    %c0_44 = arith.constant 0 : index
    %69 = vector.load %arg11[%c0_43, %c0_44] : memref<1x128xf32, #tpu.memory_space<vmem>>, vector<1x128xf32>
    %70 = vector.broadcast %69 : vector<1x128xf32> to vector<128x128xf32>
    %71 = arith.addf %68, %70 : vector<128x128xf32>
    %72 = arith.addf %71, %65 : vector<128x128xf32>
    %cst_45 = arith.constant 0.000000e+00 : f32
    %73 = vector.broadcast %cst_45 : f32 to vector<128x128xf32>
    %74 = arith.maximumf %72, %73 : vector<128x128xf32>
    %75 = arith.truncf %74 : vector<128x128xf32> to vector<128x128xbf16>
    %c0_46 = arith.constant 0 : index
    %c0_47 = arith.constant 0 : index
    %c0_48 = arith.constant 0 : index
    %76 = vector.load %arg12[%c0_46, %c0_47, %c0_48] : memref<1x128x128xbf16, #tpu.memory_space<vmem>>, vector<1x128x128xbf16>
    %77 = vector.shape_cast %76 : vector<1x128x128xbf16> to vector<128x128xbf16>
    %78 = vector.shape_cast %75 : vector<128x128xbf16> to vector<1x128x128xbf16>
    tpu.vector_store %arg12[%c0_46, %c0_47, %c0_48], %78 {strides = array<i32>} : memref<1x128x128xbf16, #tpu.memory_space<vmem>>, vector<1x128x128xbf16>,
    return
  }
  func.func @transform_0(%arg0: i32, %arg1: i32) -> (i32, i32, i32) {
    %c0_i32 = arith.constant 0 : i32
    %c0_i32_0 = arith.constant 0 : i32
    %c0_i32_1 = arith.constant 0 : i32
    return %arg0, %c0_i32, %c0_i32_0 : i32, i32, i32
  }
  func.func @transform_1(%arg0: i32, %arg1: i32) -> (i32, i32) {
    %c0_i32 = arith.constant 0 : i32
    %c0_i32_0 = arith.constant 0 : i32
    %c0_i32_1 = arith.constant 0 : i32
    return %c0_i32, %c0_i32_0 : i32, i32
  }
  func.func @transform_2(%arg0: i32, %arg1: i32) -> (i32, i32) {
    %c0_i32 = arith.constant 0 : i32
    %c0_i32_0 = arith.constant 0 : i32
    %c0_i32_1 = arith.constant 0 : i32
    return %c0_i32, %c0_i32_0 : i32, i32
  }
  func.func @transform_3(%arg0: i32, %arg1: i32) -> (i32, i32) {
    %c0_i32 = arith.constant 0 : i32
    %c0_i32_0 = arith.constant 0 : i32
    %c0_i32_1 = arith.constant 0 : i32
    return %c0_i32, %c0_i32_0 : i32, i32
  }
  func.func @transform_4(%arg0: i32, %arg1: i32) -> (i32, i32, i32) {
    %c0_i32 = arith.constant 0 : i32
    %c0_i32_0 = arith.constant 0 : i32
    %c0_i32_1 = arith.constant 0 : i32
    %c0_i32_2 = arith.constant 0 : i32
    return %c0_i32, %c0_i32_0, %c0_i32_1 : i32, i32, i32
  }
  func.func @transform_5(%arg0: i32, %arg1: i32) -> (i32, i32) {
    %c0_i32 = arith.constant 0 : i32
    %c0_i32_0 = arith.constant 0 : i32
    %c0_i32_1 = arith.constant 0 : i32
    return %c0_i32, %c0_i32_0 : i32, i32
  }
  func.func @transform_6(%arg0: i32, %arg1: i32) -> (i32, i32) {
    %c0_i32 = arith.constant 0 : i32
    %c0_i32_0 = arith.constant 0 : i32
    %c0_i32_1 = arith.constant 0 : i32
    return %c0_i32, %c0_i32_0 : i32, i32
  }
  func.func @transform_7(%arg0: i32, %arg1: i32) -> (i32, i32) {
    %c0_i32 = arith.constant 0 : i32
    %c0_i32_0 = arith.constant 0 : i32
    %c0_i32_1 = arith.constant 0 : i32
    return %c0_i32, %c0_i32_0 : i32, i32
  }
  func.func @transform_8(%arg0: i32, %arg1: i32) -> (i32, i32) {
    %c0_i32 = arith.constant 0 : i32
    %c0_i32_0 = arith.constant 0 : i32
    %c0_i32_1 = arith.constant 0 : i32
    return %c0_i32, %c0_i32_0 : i32, i32
  }
  func.func @transform_9(%arg0: i32, %arg1: i32) -> (i32, i32) {
    %c0_i32 = arith.constant 0 : i32
    %c0_i32_0 = arith.constant 0 : i32
    %c0_i32_1 = arith.constant 0 : i32
    return %c0_i32, %c0_i32_0 : i32, i32
  }
  func.func @transform_10(%arg0: i32, %arg1: i32) -> (i32, i32, i32) {
    %c0_i32 = arith.constant 0 : i32
    %c0_i32_0 = arith.constant 0 : i32
    return %arg0, %arg1, %c0_i32 : i32, i32, i32
  }
}

</mosaic_0001>

<bundles_post_ra>
// kernel: tpu_custom_call.1
= control target key start
LH: loop header
LB: loop body
LE: loop exit
PB: predicated region body
PF: predicated region fallthrough
CT: control target
= control target key end

     0   :  { %15 = vsyncpa [#allocation4], 0  ;;  %s4926_s0 = inlined_call_operand.vmem [shape: bf16[2,256,128], index: 0, kind: input, shape index: {}]   ;;  %s4927_s1 = inlined_call_operand.vmem [shape: bf16[128,32], index: 1, kind: input, shape index: {}]   ;;  %s4928_s2 = inlined_call_operand.vmem [shape: f32[1,32], index: 2, kind: input, shape index: {}]   ;;  %s4929_s3 = inlined_call_operand.vmem [shape: f32[1,32], index: 3, kind: input, shape index: {}]   ;;  %s4930_s4 = inlined_call_operand.vmem [shape: bf16[3,96,32], index: 4, kind: input, shape index: {}]   ;;  %s4931_s5 = inlined_call_operand.vmem [shape: f32[1,32], index: 5, kind: input, shape index: {}]   ;;  %s4932_s6 = inlined_call_operand.vmem [shape: f32[1,32], index: 6, kind: input, shape index: {}]   ;;  %s4933_s7 = inlined_call_operand.vmem [shape: bf16[32,128], index: 7, kind: input, shape index: {}]   ;;  %s4934_s8 = inlined_call_operand.vmem [shape: f32[1,128], index: 8, kind: input, shape index: {}]   ;;  %s4935_s9 = inlined_call_operand.vmem [shape: f32[1,128], index: 9, kind: input, shape index: {}]   ;;  %s4936_s10 = inlined_call_operand.hbm [shape: bf16[2,256,128], index: 10, kind: output, shape index: {}]  }
   0x1   :  { %17 = vsyncpa [#allocation4 + $0x1], 0  ;;  %s3886_s13 = smov 0   ;;  %s3888_s14 = smov 0  }
   0x2   :  { %s3890_s15 = smov 0   ;;  %s3892_s16 = smov 0  }
   0x3   :  { %s3894_s17 = smov 0   ;;  %s3896_s18 = smov 0  }
   0x4   :  { %s3898_s19 = smov 0   ;;  %s3900_s20 = smov 0  }
   0x5 LB: > { %4942 = sst [smem:[#allocation6_spill]] %s3816_s18  ;;  %s2974_s21 = sadd.s32 4294967295, %s3824_s20   ;;  %s3824_s20 = sphi %s3900_s20, %s23_s20   ;;  %s3820_s19 = sphi %s3898_s19, %s4957_s19   ;;  %s3816_s18 = sphi %s3896_s18, %s4951_s18   ;;  %s3812_s17 = sphi %s3894_s17, %s4956_s17   ;;  %s3808_s16 = sphi %s3892_s16, %s4950_s16   ;;  %s3804_s15 = sphi %s3890_s15, %s4955_s15   ;;  %s3800_s14 = sphi %s3888_s14, %s4954_s14   ;;  %s3796_s13 = sphi %s3886_s13, %s4953_s13  }
   0x6   : > { %s2975_s22 = sadd.s32 4294967294, %s3824_s20   ;;  %s32_s23 = sadd.s32 1, %s3816_s18 }
   0x7   : > { %p33_p0 = scmp.ge.s32.totalorder %s32_s23, 2  ;;  %s35_s24 = sadd.s32 1, %s3820_s19 }
   0x8   : > { %p269_p1 = scmp.ne.s32.totalorder %s3804_s15, %s3800_s14  ;;  %p270_p2 = scmp.eq.s32.totalorder %s2974_s21, 3 }
   0x9   : > { %s4959_s23 = smov (%p33_p0, %s32_s23), 0  ;;  %s4961_s24 = smov (!%p33_p0, %s35_s24), %s3820_s19 }
   0xa   : > { %4943 = sst [smem:[#allocation7_spill]] %s4959_s23  ;;  %s255_s25 = ssub.s32 %s3816_s18, %s4959_s23 }
   0xb   : > { %p3937_p3 = por %p270_p2, %p269_p1  ;;  %p37_p4 = scmp.ge.s32.totalorder %s4961_s24, 2 }
   0xc   : > { %p275_p5 = scmp.ne.s32.totalorder %s3800_s14, %s3796_s13  ;;  %p276_p6 = scmp.eq.s32.totalorder %s2975_s22, 3 }
   0xd   : > { %p2978_p7 = scmp.ge.s32.totalorder %s3824_s20, 1  ;;  %s4963_s24 = smov (%p37_p4, %s4961_s24), 0 }
   0xe   : > { %4945 = sst [smem:[#allocation8_spill]] %s4963_s24  ;;  %p3946_p8 = por %p276_p6, %p275_p5 }
   0xf   : > { %p329_p9 = scmp.lt.s32.totalorder %s3824_s20, 5  ;;  %s254_s28 = ssub.s32 %s3820_s19, %s4963_s24 }
  0x10   : > { %s4946_s27 = scalar_select %p3946_p8, 1, 0 }
  0x11   : > { %s259_s29 = sadd.s32 1, %s3804_s15  ;;  %s256_s30 = sor.u32 %s255_s25, %s254_s28 }
  0x12   : > { %4947 = sst [smem:[#allocation9_spill]] %s4946_s27  ;;  %p330_p10 = pnand %p2978_p7, %p329_p9 }
  0x13   : > { %p257_p11 = scmp.eq.s32.totalorder %s256_s30, 0  ;;  %s4941_s12 = sand.u32 (!%p330_p10), 1, %s3800_s14  }
  0x14   : > { %333 = sbr.rel (%p330_p10) target bundleno = 1072 (0x430), region = 60  ;;  %p367_p12 = scmp.lt.s32.totalorder (!%p330_p10), %s3812_s17, 1 }
  0x15   : > { %s3955_s11 = scalar_select %p257_p11, %s3804_s15, %s259_s29  }
  0x16   : > { %s2979_s21 = sshll.u32 (!%p330_p10), %s4941_s12, 6  ;;  %p2982_p13 = scmp.ne.s32.totalorder (!%p330_p10), %s3808_s16, 0 }
  0x17   : > { %s3967_s25 = scalar_lea.vmem (!%p330_p10), [#allocation3], %s2979_s21 }
  0x1b   : > { %s368_s22 = scalar_select %p367_p12, %s3812_s17, 1 }
  0x1c   : > { %377 = sbr.rel (%p2982_p13) target bundleno = 310 (0x136), region = 64  ;;  %v3623_v0 = vld [vmem:[%s4927_s1] sm:$0xff] (!%p2982_p13)   ;;  %v3624_v1 = vld [vmem:[%s4927_s1 + $0x8] sm:$0xff] (!%p2982_p13)   ;;  %v3625_v2 = vld [vmem:[%s4927_s1 + $0x10] sm:$0xff] (!%p2982_p13)   ;;  %vm378_vm0 = vcmask (!%p2982_p13), 261120   ;;  %v3826_v24 = vmov (!%p2982_p13), 0  }
  0x1d   : > { %s3168_s23 = sshll.u32 %s368_s22, 7  ;;  %3348 = vmatprep.subr.bf16.mxu0 (!%p2982_p13), %v3623_v0  ;;  %3500 = vmatprep.subr.bf16.mxu1 (!%p2982_p13), %v3623_v0  ;;  %v3626_v3 = vld [vmem:[%s4927_s1 + $0x18] sm:$0xff] (!%p2982_p13)   ;;  %v3627_v6 = vld [vmem:[%s4927_s1 + $0x20] sm:$0xff] (!%p2982_p13)   ;;  %v3628_v7 = vld [vmem:[%s4927_s1 + $0x28] sm:$0xff] (!%p2982_p13)   ;;  %379 = vst.msk [vmem:[#allocation2] sm:$0xff] (!%p2982_p13), %vm378_vm0, %v3826_v24 }
  0x1e   : > { %s3965_s24 = scalar_lea.vmem %s4926_s0, %s3168_s23  ;;  %3349 = vmatpush3.bf16.msra.mxu0 (!%p2982_p13), %v3623_v0  ;;  %3508 = vmatpush3.bf16.msra.mxu1 (!%p2982_p13), %v3623_v0  ;;  %v3629_v8 = vld [vmem:[%s4927_s1 + $0x30] sm:$0xff] (!%p2982_p13)   ;;  %v3630_v9 = vld [vmem:[%s4927_s1 + $0x38] sm:$0xff] (!%p2982_p13)   ;;  %380 = vst.msk [vmem:[#allocation2 + $0x8] sm:$0xff] (!%p2982_p13), %vm378_vm0, %v3826_v24  ;;  %381 = vst.msk [vmem:[#allocation2 + $0x10] sm:$0xff] (!%p2982_p13), %vm378_vm0, %v3826_v24 }
  0x1f   : > { %3350 = vmatprep.subr.bf16.mxu0 (!%p2982_p13), %v3624_v1  ;;  %3501 = vmatprep.subr.bf16.mxu1 (!%p2982_p13), %v3624_v1  ;;  %v3631_v4 = vld [vmem:[%s3965_s24] sm:$0xff] (!%p2982_p13)   ;;  %v3633_v10 = vld [vmem:[%s3965_s24 + $0x8] sm:$0xff] (!%p2982_p13)   ;;  %v3635_v12 = vld [vmem:[%s3965_s24 + $0x10] sm:$0xff] (!%p2982_p13)   ;;  %383 = vst.msk [vmem:[#allocation2 + $0x198] sm:$0xff] (!%p2982_p13), %vm378_vm0, %v3826_v24 }
  0x20   : > { %v3632_v5 = vld [vmem:[%s3965_s24 + $0x40] sm:$0xff] (!%p2982_p13)   ;;  %3364 = vmatprep.mubr.bf16.mxu0 (!%p2982_p13), %v3631_v4  ;;  %v3634_v11 = vld [vmem:[%s3965_s24 + $0x48] sm:$0xff] (!%p2982_p13)   ;;  %v3636_v13 = vld [vmem:[%s3965_s24 + $0x50] sm:$0xff] (!%p2982_p13)   ;;  %384 = vst.msk [vmem:[#allocation2 + $0x1a0] sm:$0xff] (!%p2982_p13), %vm378_vm0, %v3826_v24 }
  0x21   : > { %3380 = vmatprep.mubr.bf16.mxu1 (!%p2982_p13), %v3632_v5  ;;  %v3637_v14 = vld [vmem:[%s3965_s24 + $0x18] sm:$0xff] (!%p2982_p13)   ;;  %v3639_v16 = vld [vmem:[%s3965_s24 + $0x20] sm:$0xff] (!%p2982_p13)   ;;  %v3641_v18 = vld [vmem:[%s3965_s24 + $0x28] sm:$0xff] (!%p2982_p13)   ;;  %385 = vst.msk [vmem:[#allocation2 + $0x1a8] sm:$0xff] (!%p2982_p13), %vm378_vm0, %v3826_v24 }
  0x22   : > { %3351 = vmatpush3.bf16.msra.mxu0 (!%p2982_p13), %v3624_v1  ;;  %3509 = vmatpush3.bf16.msra.mxu1 (!%p2982_p13), %v3624_v1  ;;  %v3638_v15 = vld [vmem:[%s3965_s24 + $0x58] sm:$0xff] (!%p2982_p13)   ;;  %v3640_v17 = vld [vmem:[%s3965_s24 + $0x60] sm:$0xff] (!%p2982_p13)   ;;  %v3642_v19 = vld [vmem:[%s3965_s24 + $0x68] sm:$0xff] (!%p2982_p13)   ;;  %387 = vst.msk [vmem:[#allocation2 + $0x18] sm:$0xff] (!%p2982_p13), %vm378_vm0, %v3826_v24 }
  0x23   : > { %3352 = vmatprep.subr.bf16.mxu0 %v3625_v2  ;;  %3502 = vmatprep.subr.bf16.mxu1 %v3625_v2  ;;  %v3643_v20 = vld [vmem:[%s3965_s24 + $0x30] sm:$0xff]   ;;  %v3645_v22 = vld [vmem:[%s3965_s24 + $0x38] sm:$0xff]   ;;  %388 = vst.msk [vmem:[#allocation2 + $0x30] sm:$0xff] %vm378_vm0, %v3826_v24  ;;  %389 = vst.msk [vmem:[#allocation2 + $0x48] sm:$0xff] %vm378_vm0, %v3826_v24 }
  0x24   : > { %v3644_v21 = vld [vmem:[%s3965_s24 + $0x70] sm:$0xff]   ;;  %v3646_v23 = vld [vmem:[%s3965_s24 + $0x78] sm:$0xff]   ;;  %390 = vst.msk [vmem:[#allocation2 + $0x60] sm:$0xff] %vm378_vm0, %v3826_v24  ;;  %391 = vst.msk [vmem:[#allocation2 + $0x78] sm:$0xff] %vm378_vm0, %v3826_v24 }
  0x25   : > { %392 = vst.msk [vmem:[#allocation2 + $0x90] sm:$0xff] %vm378_vm0, %v3826_v24  ;;  %393 = vst.msk [vmem:[#allocation2 + $0xa8] sm:$0xff] %vm378_vm0, %v3826_v24  ;;  %v4055_v25 = vld [vmem:[%s4928_s2] ss:$0 sm:$0xff] }
  0x26   : > { %3353 = vmatpush3.bf16.msra.mxu0 %v3625_v2  ;;  %3510 = vmatpush3.bf16.msra.mxu1 %v3625_v2  ;;  %394 = vst.msk [vmem:[#allocation2 + $0xc0] sm:$0xff] %vm378_vm0, %v3826_v24  ;;  %395 = vst.msk [vmem:[#allocation2 + $0xd8] sm:$0xff] %vm378_vm0, %v3826_v24  ;;  %v4060_v27 = vld [vmem:[%s4929_s3] ss:$0 sm:$0xff] }
  0x27   : > { %3354 = vmatprep.subr.bf16.mxu0 %v3626_v3  ;;  %3503 = vmatprep.subr.bf16.mxu1 %v3626_v3  ;;  %396 = vst.msk [vmem:[#allocation2 + $0xf0] sm:$0xff] %vm378_vm0, %v3826_v24  ;;  %397 = vst.msk [vmem:[#allocation2 + $0x108] sm:$0xff] %vm378_vm0, %v3826_v24 }
  0x28   : > { %398 = vst.msk [vmem:[#allocation2 + $0x120] sm:$0xff] %vm378_vm0, %v3826_v24  ;;  %399 = vst.msk [vmem:[#allocation2 + $0x138] sm:$0xff] %vm378_vm0, %v3826_v24 }
  0x29   : > { %400 = vst.msk [vmem:[#allocation2 + $0x150] sm:$0xff] %vm378_vm0, %v3826_v24  ;;  %401 = vst.msk [vmem:[#allocation2 + $0x168] sm:$0xff] %vm378_vm0, %v3826_v24 }
  0x2a   : > { %3355 = vmatpush3.bf16.msra.mxu0 %v3626_v3  ;;  %3511 = vmatpush3.bf16.msra.mxu1 %v3626_v3  ;;  %402 = vst.msk [vmem:[#allocation2 + $0x180] sm:$0xff] %vm378_vm0, %v3826_v24  ;;  %405 = vst.msk [vmem:[#allocation2 + $0x28] sm:$0xff] %vm378_vm0, %v3826_v24 }
  0x2b   : > { %3356 = vmatprep.subr.bf16.mxu0 %v3627_v6  ;;  %3504 = vmatprep.subr.bf16.mxu1 %v3627_v6  ;;  %406 = vst.msk [vmem:[#allocation2 + $0x40] sm:$0xff] %vm378_vm0, %v3826_v24  ;;  %407 = vst.msk [vmem:[#allocation2 + $0x58] sm:$0xff] %vm378_vm0, %v3826_v24 }
  0x2c   : > { %408 = vst.msk [vmem:[#allocation2 + $0x70] sm:$0xff] %vm378_vm0, %v3826_v24  ;;  %409 = vst.msk [vmem:[#allocation2 + $0x88] sm:$0xff] %vm378_vm0, %v3826_v24 }
  0x2d   : > { %410 = vst.msk [vmem:[#allocation2 + $0xa0] sm:$0xff] %vm378_vm0, %v3826_v24  ;;  %411 = vst.msk [vmem:[#allocation2 + $0xb8] sm:$0xff] %vm378_vm0, %v3826_v24 }
  0x2e   : > { %3357 = vmatpush3.bf16.msra.mxu0 %v3627_v6  ;;  %3512 = vmatpush3.bf16.msra.mxu1 %v3627_v6  ;;  %412 = vst.msk [vmem:[#allocation2 + $0xd0] sm:$0xff] %vm378_vm0, %v3826_v24  ;;  %413 = vst.msk [vmem:[#allocation2 + $0xe8] sm:$0xff] %vm378_vm0, %v3826_v24 }
  0x2f   : > { %3358 = vmatprep.subr.bf16.mxu0 %v3628_v7  ;;  %3505 = vmatprep.subr.bf16.mxu1 %v3628_v7  ;;  %414 = vst.msk [vmem:[#allocation2 + $0x100] sm:$0xff] %vm378_vm0, %v3826_v24  ;;  %415 = vst.msk [vmem:[#allocation2 + $0x118] sm:$0xff] %vm378_vm0, %v3826_v24 }
  0x30   : > { %416 = vst.msk [vmem:[#allocation2 + $0x130] sm:$0xff] %vm378_vm0, %v3826_v24  ;;  %417 = vst.msk [vmem:[#allocation2 + $0x148] sm:$0xff] %vm378_vm0, %v3826_v24 }
  0x31   : > { %418 = vst.msk [vmem:[#allocation2 + $0x160] sm:$0xff] %vm378_vm0, %v3826_v24  ;;  %419 = vst.msk [vmem:[#allocation2 + $0x178] sm:$0xff] %vm378_vm0, %v3826_v24 }
  0x32   : > { %3359 = vmatpush3.bf16.msra.mxu0 %v3628_v7  ;;  %3513 = vmatpush3.bf16.msra.mxu1 %v3628_v7  ;;  %420 = vst.msk [vmem:[#allocation2 + $0x190] sm:$0xff] %vm378_vm0, %v3826_v24  ;;  %386 = vst.msk [vmem:[#allocation2] sm:$0xff] %vm378_vm0, %v3826_v24 }
  0x33   : > { %3360 = vmatprep.subr.bf16.mxu0 %v3629_v8  ;;  %3506 = vmatprep.subr.bf16.mxu1 %v3629_v8  ;;  %403 = vst.msk [vmem:[#allocation2 + $0x198] sm:$0xff] %vm378_vm0, %v3826_v24  ;;  %404 = vst.msk [vmem:[#allocation2 + $0x10] sm:$0xff] %vm378_vm0, %v3826_v24 }
  0x34   : > { %421 = vst.msk [vmem:[#allocation2 + $0x1a8] sm:$0xff] %vm378_vm0, %v3826_v24 }
  0x36   : > { %3361 = vmatpush3.bf16.msra.mxu0 %v3629_v8  ;;  %3514 = vmatpush3.bf16.msra.mxu1 %v3629_v8 }
  0x37   : > { %3362 = vmatprep.subr.bf16.mxu0 %v3630_v9  ;;  %3507 = vmatprep.subr.bf16.mxu1 %v3630_v9 }
  0x3a   : > { %3363 = vmatpush3.bf16.msra.mxu0 %v3630_v9  ;;  %3515 = vmatpush3.bf16.msra.mxu1 %v3630_v9 }
  0x3d   : > { %3365 = vmatmul.mubr.bf16.vlgmr.msra.gmra.mrb[0].mxu0 %v3633_v10  ;;  %3381 = vmatmul.mubr.bf16.vlgmr.msra.gmra.mrb[0].mxu1 %v3634_v11 }
  0x3e   : > { %3368 = vmatprep.mubr.bf16.mxu0 %v3635_v12  ;;  %3384 = vmatprep.mubr.bf16.mxu1 %v3636_v13 }
  0x45   : > { %3369 = vmatmul.mubr.bf16.gmra.mrb[4].mxu0 %v3637_v14  ;;  %3385 = vmatmul.mubr.bf16.gmra.mrb[4].mxu1 %v3638_v15 }
  0x46   : > { %3372 = vmatprep.mubr.bf16.mxu0 %v3639_v16  ;;  %3388 = vmatprep.mubr.bf16.mxu1 %v3640_v17 }
  0x4d   : > { %3373 = vmatmul.mubr.bf16.gmra.mrb[8].mxu0 %v3641_v18  ;;  %3389 = vmatmul.mubr.bf16.gmra.mrb[8].mxu1 %v3642_v19 }
  0x4e   : > { %3376 = vmatprep.mubr.bf16.mxu0 %v3643_v20  ;;  %3392 = vmatprep.mubr.bf16.mxu1 %v3644_v21 }
  0x55   : > { %3377 = vmatmul.mubr.bf16.gmra.mrb[12].mxu0 %v3645_v22  ;;  %3393 = vmatmul.mubr.bf16.gmra.mrb[12].mxu1 %v3646_v23 }
 0x110   : > { %v3366_v26 = vpop.f32.mrb[0].mxu0  ;;  %v3382_v28 = vpop.f32.mrb[0].mxu1 }
 0x111   : > { %v784_v29 = vmul.f32 %v3366_v26, %v4055_v25  ;;  %v800_v30 = vmul.f32 %v3382_v28, %v4055_v25  ;;  %v648_v31 = vpop.f32.mrb[1].mxu0  ;;  %v712_v32 = vpop.f32.mrb[1].mxu1 }
 0x112   : > { %v782_v33 = vmul.f32 %v4055_v25, %v648_v31  ;;  %v798_v34 = vmul.f32 %v4055_v25, %v712_v32  ;;  %v3367_v35 = vpop.f32.mrb[2].mxu0  ;;  %v3383_v36 = vpop.f32.mrb[2].mxu1 }
 0x113   : > { %v823_v37 = vadd.f32 %v4060_v27, %v784_v29  ;;  %v839_v38 = vadd.f32 %v4060_v27, %v800_v30  ;;  %v785_v39 = vmul.f32 %v3367_v35, %v4055_v25  ;;  %v801_v40 = vmul.f32 %v3383_v36, %v4055_v25  ;;  %v651_v41 = vpop.f32.mrb[3].mxu0  ;;  %v715_v42 = vpop.f32.mrb[3].mxu1 }
 0x114   : > { %v821_v43 = vadd.f32 %v4060_v27, %v782_v33  ;;  %v837_v44 = vadd.f32 %v4060_v27, %v798_v34  ;;  %v783_v45 = vmul.f32 %v4055_v25, %v651_v41  ;;  %v799_v46 = vmul.f32 %v4055_v25, %v715_v42 }
 0x115   : > { %v824_v47 = vadd.f32 %v4060_v27, %v785_v39  ;;  %v840_v48 = vadd.f32 %v4060_v27, %v801_v40  ;;  %v855_v51 = vmax.f32 %v823_v37, 0.0  ;;  %v871_v52 = vmax.f32 %v839_v38, 0.0 }
 0x116   : > { %v822_v49 = vadd.f32 %v4060_v27, %v783_v45  ;;  %v838_v50 = vadd.f32 %v4060_v27, %v799_v46  ;;  %v853_v55 = vmax.f32 %v821_v43, 0.0  ;;  %v869_v56 = vmax.f32 %v837_v44, 0.0 }
 0x117   : > { %v856_v53 = vmax.f32 %v824_v47, 0.0  ;;  %v872_v54 = vmax.f32 %v840_v48, 0.0 }
 0x118   : > { %v854_v57 = vmax.f32 %v822_v49, 0.0  ;;  %v870_v58 = vmax.f32 %v838_v50, 0.0  ;;  %v3370_v59 = vpop.f32.mrb[4].mxu0  ;;  %v3386_v60 = vpop.f32.mrb[4].mxu1 }
 0x119   : > { %v886_v61 = vpack.c.bf16 %v856_v53, %v855_v51  ;;  %v894_v62 = vpack.c.bf16 %v872_v54, %v871_v52  ;;  %v788_v63 = vmul.f32 %v3370_v59, %v4055_v25  ;;  %v804_v0 = vmul.f32 %v3386_v60, %v4055_v25  ;;  %v664_v1 = vpop.f32.mrb[5].mxu0  ;;  %v728_v2 = vpop.f32.mrb[5].mxu1 }
 0x11a   : > { %v885_v3 = vpack.c.bf16 %v854_v57, %v853_v55  ;;  %v893_v4 = vpack.c.bf16 %v870_v58, %v869_v56  ;;  %v786_v5 = vmul.f32 %v4055_v25, %v664_v1  ;;  %v802_v6 = vmul.f32 %v4055_v25, %v728_v2  ;;  %v3371_v7 = vpop.f32.mrb[6].mxu0  ;;  %v3387_v8 = vpop.f32.mrb[6].mxu1 }
 0x11b   : > { %903 = vst.msk [vmem:[#allocation2 + $0x38] sm:$0xff] %vm378_vm0, %v886_v61  ;;  %911 = vst.msk [vmem:[#allocation2 + $0xf8] sm:$0xff] %vm378_vm0, %v894_v62  ;;  %v827_v9 = vadd.f32 %v4060_v27, %v788_v63  ;;  %v843_v10 = vadd.f32 %v4060_v27, %v804_v0  ;;  %v789_v11 = vmul.f32 %v3371_v7, %v4055_v25  ;;  %v667_v13 = vpop.f32.mrb[7].mxu0  ;;  %v731_v14 = vpop.f32.mrb[7].mxu1 }
 0x11c   : > { %v805_v12 = vmul.f32 %v3387_v8, %v4055_v25  ;;  %902 = vst.msk [vmem:[#allocation2 + $0x20] sm:$0xff] %vm378_vm0, %v885_v3  ;;  %910 = vst.msk [vmem:[#allocation2 + $0xe0] sm:$0xff] %vm378_vm0, %v893_v4  ;;  %v825_v15 = vadd.f32 %v4060_v27, %v786_v5  ;;  %v841_v16 = vadd.f32 %v4060_v27, %v802_v6 }
 0x11d   : > { %v787_v17 = vmul.f32 %v4055_v25, %v667_v13  ;;  %v803_v18 = vmul.f32 %v4055_v25, %v731_v14  ;;  %v828_v19 = vadd.f32 %v4060_v27, %v789_v11  ;;  %v859_v23 = vmax.f32 %v827_v9, 0.0 }
 0x11e   : > { %v844_v20 = vadd.f32 %v4060_v27, %v805_v12  ;;  %v875_v24 = vmax.f32 %v843_v10, 0.0  ;;  %v857_v29 = vmax.f32 %v825_v15, 0.0  ;;  %v873_v30 = vmax.f32 %v841_v16, 0.0 }
 0x11f   : > { %v826_v21 = vadd.f32 %v4060_v27, %v787_v17  ;;  %v842_v22 = vadd.f32 %v4060_v27, %v803_v18  ;;  %v860_v26 = vmax.f32 %v828_v19, 0.0 }
 0x120   : > { %v876_v28 = vmax.f32 %v844_v20, 0.0  ;;  %v3374_v33 = vpop.f32.mrb[8].mxu0  ;;  %v3390_v34 = vpop.f32.mrb[8].mxu1 }
 0x121   : > { %v858_v31 = vmax.f32 %v826_v21, 0.0  ;;  %v874_v32 = vmax.f32 %v842_v22, 0.0  ;;  %v888_v35 = vpack.c.bf16 %v860_v26, %v859_v23  ;;  %v792_v37 = vmul.f32 %v3374_v33, %v4055_v25  ;;  %v680_v39 = vpop.f32.mrb[9].mxu0  ;;  %v744_v40 = vpop.f32.mrb[9].mxu1 }
 0x122   : > { %v896_v36 = vpack.c.bf16 %v876_v28, %v875_v24  ;;  %v808_v38 = vmul.f32 %v3390_v34, %v4055_v25  ;;  %v790_v43 = vmul.f32 %v4055_v25, %v680_v39  ;;  %v806_v44 = vmul.f32 %v4055_v25, %v744_v40  ;;  %v3375_v45 = vpop.f32.mrb[10].mxu0  ;;  %v3391_v46 = vpop.f32.mrb[10].mxu1 }
 0x123   : > { %v887_v41 = vpack.c.bf16 %v858_v31, %v857_v29  ;;  %v895_v42 = vpack.c.bf16 %v874_v32, %v873_v30  ;;  %905 = vst.msk [vmem:[#allocation2 + $0x68] sm:$0xff] %vm378_vm0, %v888_v35  ;;  %v831_v47 = vadd.f32 %v4060_v27, %v792_v37  ;;  %v793_v49 = vmul.f32 %v3375_v45, %v4055_v25  ;;  %v683_v51 = vpop.f32.mrb[11].mxu0  ;;  %v747_v52 = vpop.f32.mrb[11].mxu1 }
 0x124   : > { %913 = vst.msk [vmem:[#allocation2 + $0x128] sm:$0xff] %vm378_vm0, %v896_v36  ;;  %v847_v48 = vadd.f32 %v4060_v27, %v808_v38  ;;  %v809_v50 = vmul.f32 %v3391_v46, %v4055_v25  ;;  %v829_v53 = vadd.f32 %v4060_v27, %v790_v43  ;;  %v845_v54 = vadd.f32 %v4060_v27, %v806_v44 }
 0x125   : > { %904 = vst.msk [vmem:[#allocation2 + $0x50] sm:$0xff] %vm378_vm0, %v887_v41  ;;  %912 = vst.msk [vmem:[#allocation2 + $0x110] sm:$0xff] %vm378_vm0, %v895_v42  ;;  %v791_v55 = vmul.f32 %v4055_v25, %v683_v51  ;;  %v807_v56 = vmul.f32 %v4055_v25, %v747_v52  ;;  %v832_v57 = vadd.f32 %v4060_v27, %v793_v49  ;;  %v863_v61 = vmax.f32 %v831_v47, 0.0 }
 0x126   : > { %v848_v58 = vadd.f32 %v4060_v27, %v809_v50  ;;  %v879_v62 = vmax.f32 %v847_v48, 0.0  ;;  %v861_v1 = vmax.f32 %v829_v53, 0.0  ;;  %v877_v2 = vmax.f32 %v845_v54, 0.0 }
 0x127   : > { %v830_v59 = vadd.f32 %v4060_v27, %v791_v55  ;;  %v846_v60 = vadd.f32 %v4060_v27, %v807_v56  ;;  %v864_v63 = vmax.f32 %v832_v57, 0.0 }
 0x128   : > { %v880_v0 = vmax.f32 %v848_v58, 0.0  ;;  %v3378_v5 = vpop.f32.mrb[12].mxu0  ;;  %v3394_v6 = vpop.f32.mrb[12].mxu1 }
 0x129   : > { %v862_v3 = vmax.f32 %v830_v59, 0.0  ;;  %v878_v4 = vmax.f32 %v846_v60, 0.0  ;;  %v890_v7 = vpack.c.bf16 %v864_v63, %v863_v61  ;;  %v796_v9 = vmul.f32 %v3378_v5, %v4055_v25  ;;  %v696_v11 = vpop.f32.mrb[13].mxu0  ;;  %v760_v12 = vpop.f32.mrb[13].mxu1 }
 0x12a   : > { %v898_v8 = vpack.c.bf16 %v880_v0, %v879_v62  ;;  %v812_v10 = vmul.f32 %v3394_v6, %v4055_v25  ;;  %v794_v15 = vmul.f32 %v4055_v25, %v696_v11  ;;  %v810_v16 = vmul.f32 %v4055_v25, %v760_v12  ;;  %v3379_v17 = vpop.f32.mrb[14].mxu0  ;;  %v3395_v18 = vpop.f32.mrb[14].mxu1 }
 0x12b   : > { %v889_v13 = vpack.c.bf16 %v862_v3, %v861_v1  ;;  %v897_v14 = vpack.c.bf16 %v878_v4, %v877_v2  ;;  %907 = vst.msk [vmem:[#allocation2 + $0x98] sm:$0xff] %vm378_vm0, %v890_v7  ;;  %v835_v19 = vadd.f32 %v4060_v27, %v796_v9  ;;  %v797_v21 = vmul.f32 %v3379_v17, %v4055_v25  ;;  %v699_v23 = vpop.f32.mrb[15].mxu0  ;;  %v763_v24 = vpop.f32.mrb[15].mxu1 }
 0x12c   : > { %915 = vst.msk [vmem:[#allocation2 + $0x158] sm:$0xff] %vm378_vm0, %v898_v8  ;;  %v851_v20 = vadd.f32 %v4060_v27, %v812_v10  ;;  %v813_v22 = vmul.f32 %v3395_v18, %v4055_v25  ;;  %v833_v26 = vadd.f32 %v4060_v27, %v794_v15  ;;  %v849_v28 = vadd.f32 %v4060_v27, %v810_v16 }
 0x12d   : > { %906 = vst.msk [vmem:[#allocation2 + $0x80] sm:$0xff] %vm378_vm0, %v889_v13  ;;  %914 = vst.msk [vmem:[#allocation2 + $0x140] sm:$0xff] %vm378_vm0, %v897_v14  ;;  %v795_v29 = vmul.f32 %v4055_v25, %v699_v23  ;;  %v811_v30 = vmul.f32 %v4055_v25, %v763_v24  ;;  %v836_v31 = vadd.f32 %v4060_v27, %v797_v21  ;;  %v867_v35 = vmax.f32 %v835_v19, 0.0 }
 0x12e   : > { %v852_v32 = vadd.f32 %v4060_v27, %v813_v22  ;;  %v883_v36 = vmax.f32 %v851_v20, 0.0  ;;  %v865_v39 = vmax.f32 %v833_v26, 0.0  ;;  %v881_v40 = vmax.f32 %v849_v28, 0.0 }
 0x12f   : > { %v834_v33 = vadd.f32 %v4060_v27, %v795_v29  ;;  %v850_v34 = vadd.f32 %v4060_v27, %v811_v30  ;;  %v868_v37 = vmax.f32 %v836_v31, 0.0 }
 0x130   : > { %v884_v38 = vmax.f32 %v852_v32, 0.0 }
 0x131   : > { %v866_v41 = vmax.f32 %v834_v33, 0.0  ;;  %v882_v42 = vmax.f32 %v850_v34, 0.0  ;;  %v892_v43 = vpack.c.bf16 %v868_v37, %v867_v35 }
 0x132   : > { %v900_v44 = vpack.c.bf16 %v884_v38, %v883_v36 }
 0x133   : > { %v891_v45 = vpack.c.bf16 %v866_v41, %v865_v39  ;;  %v899_v25 = vpack.c.bf16 %v882_v42, %v881_v40  ;;  %909 = vst.msk [vmem:[#allocation2 + $0xc8] sm:$0xff] %vm378_vm0, %v892_v43 }
 0x134   : > { %917 = vst.msk [vmem:[#allocation2 + $0x188] sm:$0xff] %vm378_vm0, %v900_v44 }
 0x135   : > { %908 = vst.msk [vmem:[#allocation2 + $0xb0] sm:$0xff] %vm378_vm0, %v891_v45  ;;  %916 = vst.msk [vmem:[#allocation2 + $0x170] sm:$0xff] %vm378_vm0, %v899_v25 }
 0x136 PF: > { %s3169_s29 = smul.u32 192, %s3808_s16  ;;  %v3707_v27 = vld [vmem:[%s4930_s4] sm:$0xff]   ;;  %v3708_v46 = vld [vmem:[%s4930_s4 + $0x8] sm:$0xff]   ;;  %v3709_v47 = vld [vmem:[%s4930_s4 + $0x10] sm:$0xff]   ;;  %vm1050_vm1 = vcmask 1046528   ;;  %s3827_s28 = smov 64  }
 0x137   : > { %3424 = vmatprep.subr.bf16.mxu0 %v3707_v27  ;;  %v3710_v7 = vld [vmem:[%s4930_s4 + $0x18] sm:$0xff]   ;;  %s3828_s18 = smov 32   ;;  %v3711_v12 = vld [vmem:[%s4930_s4 + $0x20] sm:$0xff]   ;;  %v3712_v22 = vld [vmem:[%s4930_s4 + $0x28] sm:$0xff]   ;;  %vm1107_vm2 = vcmask 261120   ;;  %vm1148_vm3 = vcmask 523264  }
 0x138   : > { %s4152_s22 = scalar_lea.vmem [#allocation2], %s3169_s29  ;;  %3425 = vmatpush3.bf16.msra.mxu0 %v3707_v27  ;;  %vm1181_vm4 = vsmask.f32 256  ;;  %vm1663_vm5 = vcmask 785408   ;;  %s4948_s27 = sand.u32 1, %s3800_s14  }
 0x139   : > { %3426 = vmatprep.subr.bf16.mxu0 %v3708_v46  ;;  %s4872_s21 = scalar_lea.sflag [#allocation4], %s4948_s27 }
 0x13c   : > { %v4155_v48 = vld [vmem:[%s4152_s22 + $0x8] sm:$0xff]  ;;  %v4158_v49 = vld [vmem:[%s4152_s22 + $0x20] sm:$0xff]  ;;  %v938_v54 = vld [vmem:[%s4152_s22 + $0x10] sm:$0x1]  ;;  %3427 = vmatpush3.bf16.msra.mxu0 %v3708_v46 }
 0x13d   : > { %v939_v50 = vld [vmem:[%s4152_s22 + $0x28] sm:$0x1]  ;;  %v1051_v51 = vrot.slane %v4155_v48, 1  ;;  %v4163_v52 = vrot.slane %v4158_v49, 1  ;;  %v947_v55 = vshll.u32 %v4155_v48, 16  ;;  %v1052_v56 = vrot.slane %v938_v54, 1  ;;  %3428 = vmatprep.subr.bf16.mxu0 %v3709_v47 }
 0x13e   : > { %v1055_v53 = vrot.slane %v939_v50, 1  ;;  %v950_v57 = vshrl.u32 %v4155_v48, 16  ;;  %v954_v58 = vshll.u32 %v4158_v49, 16  ;;  %v4170_v59 = vld [vmem:[%s4152_s22 + $0x38] sm:$0xff]  ;;  %v957_v1 = vshrl.u32 %v4158_v49, 16  ;;  %v4182_v3 = vld [vmem:[%s4152_s22 + $0x50] sm:$0xff] }
 0x13f   : > { %1075 = vrot.lane.b32.xlu1 %v1051_v51, %s3827_s28  ;;  %v949_v61 = vrot.slane %v947_v55, 1  ;;  %v961_v62 = vshll.u32 %v4170_v59, 16  ;;  %v1053_v63 = vsel %vm1050_vm1, %v1051_v51, %v1052_v56  ;;  %v964_v6 = vshrl.u32 %v4170_v59, 16  ;;  %v940_v9 = vld [vmem:[%s4152_s22 + $0x40] sm:$0x1]  ;;  %v4199_v11 = vld [vmem:[%s4152_s22 + $0x68] sm:$0xff] }
 0x140   : > { %v1056_v60 = vsel %vm1050_vm1, %v4163_v52, %v1055_v53  ;;  %v4178_v0 = vrot.slane %v954_v58, 1  ;;  %v968_v10 = vshll.u32 %v4182_v3, 16  ;;  %3429 = vmatpush3.bf16.msra.mxu0 %v3709_v47  ;;  %v4209_v14 = vrot.slane %v4170_v59, 1  ;;  %v4217_v18 = vld [vmem:[%s4152_s22 + $0x80] sm:$0xff]  ;;  %v4221_v20 = vld [vmem:[%s4152_s22 + $0x98] sm:$0xff]  ;;  %v4291_v50 = vld [vmem:[%s4152_s22 + $0xb0] sm:$0xff] }
 0x141   : > { %1081 = vrot.lane.b32.xlu0 %v1056_v60, %s3827_s28  ;;  %v952_v2 = vor.u32 %v950_v57, %v949_v61  ;;  %v4186_v5 = vrot.slane %v961_v62, 1  ;;  %3430 = vmatprep.subr.bf16.mxu0 %v3710_v7  ;;  %v1058_v15 = vrot.slane %v940_v9, 1  ;;  %v971_v17 = vshrl.u32 %v4182_v3, 16  ;;  %v941_v21 = vld [vmem:[%s4152_s22 + $0x58] sm:$0x1]  ;;  %v4342_v9 = vld [vmem:[%s4930_s4 + $0x60] sm:$0xff]  }
 0x142   : > { %v3647_v4 = vpack.i.bf16 %v4178_v0, %v949_v61  ;;  %v4194_v8 = vor.u32 %v957_v1, %v4178_v0  ;;  %v4213_v16 = vrot.slane %v968_v10, 1  ;;  %v975_v19 = vshll.u32 %v4199_v11, 16  ;;  %v942_v40 = vld [vmem:[%s4152_s22 + $0x70] sm:$0x1]  ;;  %v943_v41 = vld [vmem:[%s4152_s22 + $0x88] sm:$0x1] }
 0x143   : > { %1077 = vrot.lane.b32.xlu1 %v1053_v63, %s3827_s28  ;;  %v4206_v13 = vor.u32 %v964_v6, %v4186_v5  ;;  %v1059_v23 = vsel %vm1050_vm1, %v4209_v14, %v1058_v15  ;;  %v982_v24 = vshll.u32 %v4217_v18, 16  ;;  %v989_v26 = vshll.u32 %v4221_v20, 16  ;;  %v944_v55 = vld [vmem:[%s4152_s22 + $0xa0] sm:$0x1]  ;;  %v945_v62 = vld [vmem:[%s4152_s22 + $0xb8] sm:$0x1] }
 0x144   : > { %3431 = vmatpush3.bf16.msra.mxu0 %v3710_v7  ;;  %v4236_v28 = vor.u32 %v971_v17, %v4213_v16  ;;  %v4239_v29 = vrot.slane %v4182_v3, 1  ;;  %v1061_v30 = vrot.slane %v941_v21, 1  ;;  %v4241_v31 = vrot.slane %v975_v19, 1  ;;  %v3714_v10 = vld [vmem:[%s4930_s4 + $0x30] sm:$0xff]   ;;  %v3716_v17 = vld [vmem:[%s4930_s4 + $0x38] sm:$0xff]  }
 0x145   : > { %1004 = vrot.lane.b32.xlu0 %v952_v2, %s3828_s18  ;;  %3432 = vmatprep.subr.bf16.mxu0 %v3711_v12  ;;  %v4246_v33 = vrot.slane %v982_v24, 1  ;;  %v4248_v34 = vrot.slane %v989_v26, 1  ;;  %v4256_v36 = vpack.i.bf16 %v4213_v16, %v4186_v5  ;;  %v985_v38 = vshrl.u32 %v4217_v18, 16  ;;  %v3096_v19 = vld [vmem:[%s4152_s22 + $0x40] sm:$0x1] }
 0x146   : > { %v3677_v32 = vpack.i.bf16 %v4241_v31, %v4213_v16  ;;  %v1062_v35 = vsel %vm1050_vm1, %v4239_v29, %v1061_v30  ;;  %v978_v39 = vshrl.u32 %v4199_v11, 16  ;;  %v4268_v42 = vrot.slane %v4199_v11, 1  ;;  %3396 = vmatprep.subr.bf16.mxu1 %v3714_v10  ;;  %v3031_v24 = vld [vmem:[%s4152_s22 + $0x40] sm:$0x1]  ;;  %v3720_v30 = vld [vmem:[%s4930_s4 + $0x48] sm:$0xff]  }
 0x147   : > { %3648 = vrot.lane.b32.xlu1 %v3647_v4, %s3828_s18  ;;  %v3687_v37 = vpack.i.bf16 %v4248_v34, %v4246_v33  ;;  %v4273_v43 = vor.u32 %v985_v38, %v4246_v33  ;;  %v1064_v45 = vrot.slane %v942_v40, 1  ;;  %v4281_v25 = vrot.slane %v4217_v18, 1  ;;  %3397 = vmatpush3.bf16.msra.mxu1 %v3714_v10 }
 0x148   : > { %3433 = vmatpush3.bf16.msra.mxu0 %v3711_v12  ;;  %v4278_v44 = vor.u32 %v978_v39, %v4241_v31  ;;  %v1067_v27 = vrot.slane %v943_v41, 1  ;;  %v992_v46 = vshrl.u32 %v4221_v20, 16  ;;  %v4288_v47 = vpack.i.bf16 %v4246_v33, %v4241_v31  ;;  %v3030_v12 = vld [vmem:[%s4152_s22 + $0x28] sm:$0x1]  ;;  %3398 = vmatprep.subr.bf16.mxu1 %v3716_v17  ;;  %v3722_v39 = vld [vmem:[%s4930_s4 + $0x50] sm:$0xff]   ;;  %v3724_v41 = vld [vmem:[%s4930_s4 + $0x58] sm:$0xff]  }
 0x149   : > { %1008 = vrot.lane.b32.xlu0 %v4194_v8, %s3828_s18  ;;  %3434 = vmatprep.subr.bf16.mxu0 %v3712_v22  ;;  %v1065_v51 = vsel %vm1050_vm1, %v4268_v42, %v1064_v45  ;;  %v996_v53 = vshll.u32 %v4291_v50, 16  ;;  %v4311_v57 = vrot.slane %v4221_v20, 1  ;;  %v1070_v58 = vrot.slane %v944_v55, 1  ;;  %v3034_v55 = vld [vmem:[%s4152_s22 + $0x88] sm:$0x1] }
 0x14a   : > { %v1068_v54 = vsel %vm1050_vm1, %v4281_v25, %v1067_v27  ;;  %v4307_v56 = vor.u32 %v992_v46, %v4248_v34  ;;  %v999_v61 = vshrl.u32 %v4291_v50, 16  ;;  %v4327_v2 = vrot.slane %v4291_v50, 1  ;;  %v3098_v27 = vld [vmem:[%s4152_s22 + $0x70] sm:$0x1]  ;;  %v3100_v31 = vld [vmem:[%s4152_s22 + $0xa0] sm:$0x1] }
 0x14b   : > { %1012 = vrot.lane.b32.xlu1 %v4206_v13, %s3828_s18  ;;  %v4313_v60 = vrot.slane %v996_v53, 1  ;;  %v1071_v63 = vsel %vm1050_vm1, %v4311_v57, %v1070_v58  ;;  %v1073_v4 = vrot.slane %v945_v62, 1  ;;  %v1407_v15 = vrot.slane %v3030_v12, 1  ;;  %3399 = vmatpush3.bf16.msra.mxu1 %v3716_v17  ;;  %v3099_v53 = vld [vmem:[%s4152_s22 + $0x88] sm:$0x1] }
 0x14c   : > { %3435 = vmatpush3.bf16.msra.mxu0 %v3712_v22  ;;  %v2075_v22 = vrot.slane %v3096_v19, 1  ;;  %v2081_v46 = vrot.slane %v3098_v27, 1  ;;  %v1419_v16 = vrot.slane %v3034_v55, 1  ;;  %v3035_v58 = vld [vmem:[%s4152_s22 + $0xa0] sm:$0x1] }
 0x14d   : > { %1079 = vrot.lane.b32.xlu0 %v4163_v52, %s3827_s28  ;;  %v4324_v1 = vor.u32 %v999_v61, %v4313_v60  ;;  %v1074_v6 = vsel %vm1050_vm1, %v4327_v2, %v1073_v4  ;;  %v4336_v7 = vpack.i.bf16 %v4313_v60, %v4248_v34  ;;  %3452 = vmatprep.subr.bf16.mxu0 %v4342_v9  ;;  %v1422_v62 = vrot.slane %v3035_v58, 1  ;;  %v3101_v4 = vld [vmem:[%s4152_s22 + $0xb8] sm:$0x1]  ;;  %v922_v17 = vld [vmem:[%s4152_s22] sm:$0x80] }
 0x14e   : > { %v1408_v21 = vsel %vm1050_vm1, %v4163_v52, %v1407_v15  ;;  %v2076_v26 = vsel %vm1050_vm1, %v4209_v14, %v2075_v22  ;;  %v924_v19 = vld [vmem:[%s4152_s22 + $0x18] sm:$0x80]  ;;  %v3036_v58 = vld [vmem:[%s4152_s22 + $0xb8] sm:$0x1] }
 0x14f   : > { %1085 = vrot.lane.b32.xlu1 %v1059_v23, %s3827_s28  ;;  %v3718_v23 = vld [vmem:[%s4930_s4 + $0x40] sm:$0xff]  }
 0x150   : > { %3400 = vmatprep.subr.bf16.mxu1 %v3718_v23 }
 0x151   : > { %1016 = vrot.lane.b32.xlu0 %v4236_v28, %s3828_s18  ;;  %3401 = vmatpush3.bf16.msra.mxu1 %v3718_v23 }
 0x152   : > { %3402 = vmatprep.subr.bf16.mxu1 %v3720_v30 }
 0x153   : > { %1089 = vrot.lane.b32.xlu1 %v1062_v35, %s3827_s28  ;;  %v3097_v35 = vld [vmem:[%s4152_s22 + $0x58] sm:$0x1] }
 0x154   : > { %v2078_v40 = vrot.slane %v3097_v35, 1 }
 0x155   : > { %3653 = vrot.lane.b32.xlu0 %v4256_v36, %s3828_s18  ;;  %3403 = vmatpush3.bf16.msra.mxu1 %v3720_v30 }
 0x156   : > { %3404 = vmatprep.subr.bf16.mxu1 %v3722_v39  ;;  %v2079_v45 = vsel %vm1050_vm1, %v4239_v29, %v2078_v40 }
 0x157   : > { %1087 = vrot.lane.b32.xlu1 %v4239_v29, %s3827_s28 }
 0x159   : > { %1083 = vrot.lane.b32.xlu0 %v4209_v14, %s3827_s28  ;;  %3405 = vmatpush3.bf16.msra.mxu1 %v3722_v39 }
 0x15a   : > { %3406 = vmatprep.subr.bf16.mxu1 %v3724_v41 }
 0x15b   : > { %1024 = vrot.lane.b32.xlu1 %v4273_v43, %s3828_s18 }
 0x15d   : > { %1020 = vrot.lane.b32.xlu0 %v4278_v44, %s3828_s18  ;;  %3407 = vmatpush3.bf16.msra.mxu1 %v3724_v41 }
 0x15f   : > { %3658 = vrot.lane.b32.xlu1 %v4288_v47, %s3828_s18 }
 0x161   : > { %1093 = vrot.lane.b32.xlu0 %v1065_v51, %s3827_s28 }
 0x163   : > { %1091 = vrot.lane.b32.xlu1 %v4268_v42, %s3827_s28 }
 0x165   : > { %1097 = vrot.lane.b32.xlu0 %v1068_v54, %s3827_s28  ;;  %v2084_v54 = vrot.slane %v3099_v53, 1 }
 0x167   : > { %1028 = vrot.lane.b32.xlu1 %v4307_v56, %s3828_s18 }
 0x169   : > { %1095 = vrot.lane.b32.xlu0 %v4281_v25, %s3827_s28 }
 0x16b   : > { %1101 = vrot.lane.b32.xlu1 %v1071_v63, %s3827_s28 }
 0x16d   : > { %1032 = vrot.lane.b32.xlu0 %v4324_v1, %s3828_s18 }
 0x16f   : > { %1105 = vrot.lane.b32.xlu1 %v1074_v6, %s3827_s28 }
 0x171   : > { %3663 = vrot.lane.b32.xlu0 %v4336_v7, %s3828_s18 }
 0x173   : > { %1103 = vrot.lane.b32.xlu1 %v4327_v2, %s3827_s28 }
 0x175   : > { %1099 = vrot.lane.b32.xlu0 %v4311_v57, %s3827_s28 }
 0x177   : > { %2028 = vrot.lane.b32.xlu1 %v4206_v13, %s3828_s18 }
 0x179   : > { %1360 = vrot.lane.b32.xlu0 %v4194_v8, %s3828_s18  ;;  %v1410_v8 = vrot.slane %v3031_v24, 1 }
 0x17b   : > { %1432 = vrot.lane.b32.xlu1 %v1408_v21, %s3827_s28  ;;  %v1411_v38 = vsel %vm1050_vm1, %v4209_v14, %v1410_v8  ;;  %v2090_v21 = vrot.slane %v3101_v4, 1 }
 0x17d   : > { %1364 = vrot.lane.b32.xlu0 %v4206_v13, %s3828_s18  ;;  %v3667_v13 = vpack.i.bf16 %v4186_v5, %v4178_v0  ;;  %v3032_v0 = vld [vmem:[%s4152_s22 + $0x58] sm:$0x1]  ;;  %v2091_v40 = vsel %vm1050_vm1, %v4327_v2, %v2090_v21 }
 0x17e   : > { %v1413_v5 = vrot.slane %v3032_v0, 1 }
 0x17f   : > { %2100 = vrot.lane.b32.xlu1 %v2076_v26, %s3827_s28 }
 0x181   : > { %2032 = vrot.lane.b32.xlu0 %v4236_v28, %s3828_s18 }
 0x183   : > { %1436 = vrot.lane.b32.xlu1 %v1411_v38, %s3827_s28  ;;  %v4480_v38 = vld [vmem:[%s4152_s22 + $0xc8] sm:$0xff] }
 0x184   : > { %v2013_v34 = vshll.u32 %v4480_v38, 16 }
 0x185   : > { %3668 = vrot.lane.b32.xlu0 %v3667_v13, %s3828_s18 }
 0x186   : > { %v4497_v55 = vrot.slane %v2013_v34, 1 }
 0x187   : > { %3673 = vrot.lane.b32.xlu1 %v4256_v36, %s3828_s18  ;;  %v1414_v36 = vsel %vm1050_vm1, %v4239_v29, %v1413_v5 }
 0x189   : > { %2104 = vrot.lane.b32.xlu0 %v2079_v45, %s3827_s28 }
 0x18b   : > { %2098 = vrot.lane.b32.xlu1 %v4209_v14, %s3827_s28 }
 0x18d   : > { %1430 = vrot.lane.b32.xlu0 %v4163_v52, %s3827_s28  ;;  %v3033_v52 = vld [vmem:[%s4152_s22 + $0x70] sm:$0x1] }
 0x18e   : > { %v1416_v51 = vrot.slane %v3033_v52, 1 }
 0x18f   : > { %2102 = vrot.lane.b32.xlu1 %v4239_v29, %s3827_s28 }
 0x191   : > { %1434 = vrot.lane.b32.xlu0 %v4209_v14, %s3827_s28  ;;  %v2082_v14 = vsel %vm1050_vm1, %v4268_v42, %v2081_v46 }
 0x193   : > { %2036 = vrot.lane.b32.xlu1 %v4278_v44, %s3828_s18 }
 0x195   : > { %1368 = vrot.lane.b32.xlu0 %v4236_v28, %s3828_s18  ;;  %v1417_v28 = vsel %vm1050_vm1, %v4268_v42, %v1416_v51 }
 0x197   : > { %1440 = vrot.lane.b32.xlu1 %v1414_v36, %s3827_s28 }
 0x199   : > { %1372 = vrot.lane.b32.xlu0 %v4278_v44, %s3828_s18  ;;  %v2085_v44 = vsel %vm1050_vm1, %v4281_v25, %v2084_v54 }
 0x19b   : > { %2108 = vrot.lane.b32.xlu1 %v2082_v14, %s3827_s28 }
 0x19d   : > { %2040 = vrot.lane.b32.xlu0 %v4273_v43, %s3828_s18 }
 0x19f   : > { %1444 = vrot.lane.b32.xlu1 %v1417_v28, %s3827_s28 }
 0x1a1   : > { %3678 = vrot.lane.b32.xlu0 %v3677_v32, %s3828_s18  ;;  %v1420_v32 = vsel %vm1050_vm1, %v4281_v25, %v1419_v16  ;;  %v2016_v16 = vshrl.u32 %v4480_v38, 16 }
 0x1a3   : > { %3683 = vrot.lane.b32.xlu1 %v4288_v47, %s3828_s18 }
 0x1a5   : > { %2112 = vrot.lane.b32.xlu0 %v2085_v44, %s3827_s28 }
 0x1a7   : > { %2106 = vrot.lane.b32.xlu1 %v4268_v42, %s3827_s28 }
 0x1a9   : > { %1438 = vrot.lane.b32.xlu0 %v4239_v29, %s3827_s28  ;;  %v2087_v29 = vrot.slane %v3100_v31, 1  ;;  %v3715_v31 = vld [vmem:[%s4930_s4 + $0x68] sm:$0xff]  }
 0x1ab   : > { %2110 = vrot.lane.b32.xlu1 %v4281_v25, %s3827_s28 }
 0x1ad   : > { %1442 = vrot.lane.b32.xlu0 %v4268_v42, %s3827_s28  ;;  %v2088_v42 = vsel %vm1050_vm1, %v4311_v57, %v2087_v29 }
 0x1af   : > { %2044 = vrot.lane.b32.xlu1 %v4307_v56, %s3828_s18 }
 0x1b1   : > { %1376 = vrot.lane.b32.xlu0 %v4273_v43, %s3828_s18  ;;  %v1076_v47 = vpop.permute.xlu1 %1075 }
 0x1b3   : > { %v1082_v61 = vpop.permute.xlu0 %1081  ;;  %1448 = vrot.lane.b32.xlu1 %v1420_v32, %s3827_s28 }
 0x1b5   : > { %1380 = vrot.lane.b32.xlu0 %v4307_v56, %s3828_s18  ;;  %v1078_v43 = vpop.permute.xlu1 %1077  ;;  %v1423_v56 = vsel %vm1050_vm1, %v4311_v57, %v1422_v62 }
 0x1b7   : > { %v1005_v63 = vpop.permute.xlu0 %1004  ;;  %2116 = vrot.lane.b32.xlu1 %v2088_v42, %s3827_s28 }
 0x1b8   : > { %v1112_v6 = vsel %vm1107_vm2, %v4155_v48, %v1005_v63  ;;  %v928_v63 = vld [vmem:[%s4152_s22 + $0x48] sm:$0x80] }
 0x1b9   : > { %v1152_v10 = vsel %vm1148_vm3, %v1112_v6, %v1078_v43  ;;  %2048 = vrot.lane.b32.xlu0 %v4324_v1, %s3828_s18  ;;  %v3649_v15 = vpop.permute.xlu1 %3648  ;;  %v926_v6 = vld [vmem:[%s4152_s22 + $0x30] sm:$0x80] }
 0x1ba   : > { %v1185_v12 = vshrl.u32 %v1152_v10, 16  ;;  %v3651_v22 = vunpack.i.h.bf16 %v3649_v15  ;;  %v3650_v23 = vunpack.i.l.bf16 %v3649_v15  ;;  %v1188_v45 = vshll.u32 %v1152_v10, 16 }
 0x1bb   : > { %v1009_v24 = vpop.permute.xlu0 %1008  ;;  %1452 = vrot.lane.b32.xlu1 %v1423_v56, %s3827_s28  ;;  %v2018_v10 = vor.u32 %v2016_v16, %v4497_v55  ;;  %v3102_v56 = vld [vmem:[%s4152_s22 + $0xd0] sm:$0x1] }
 0x1bc   : > { %v1117_v48 = vsel %vm1107_vm2, %v4158_v49, %v1009_v24  ;;  %v1187_v26 = vrot.slane %v1185_v12, 7  ;;  %v1110_v8 = vsel %vm1107_vm2, %v922_v17, %v3650_v23  ;;  %v1115_v35 = vsel %vm1107_vm2, %v924_v19, %v3651_v22  ;;  %v3717_v12 = vld [vmem:[%s4930_s4 + $0x70] sm:$0xff]  }
 0x1bd   : > { %v1156_v30 = vsel %vm1148_vm3, %v1117_v48, %v1082_v61  ;;  %3688 = vrot.lane.b32.xlu0 %v3687_v37, %s3828_s18  ;;  %v1013_v39 = vpop.permute.xlu1 %1012  ;;  %v1150_v41 = vsel %vm1148_vm3, %v1110_v8, %v1076_v47  ;;  %v4511_v61 = vld [vmem:[%s4152_s22 + $0xe0] sm:$0xff]  ;;  %v1425_v17 = vrot.slane %v3036_v58, 1  ;;  %v4529_v22 = vrot.slane %v4480_v38, 1 }
 0x1be   : > { %v1195_v13 = vshrl.u32 %v1156_v30, 16  ;;  %v1182_v5 = vshrl.u32 %v1150_v41, 16  ;;  %v1198_v36 = vshll.u32 %v1156_v30, 16  ;;  %v1190_v52 = vor.u32 %v1188_v45, %v1187_v26 }
 0x1bf   : > { %v1080_v0 = vpop.permute.xlu0 %1079  ;;  %3693 = vrot.lane.b32.xlu1 %v4336_v7, %s3828_s18  ;;  %v1122_v53 = vsel %vm1107_vm2, %v4170_v59, %v1013_v39  ;;  %v2093_v8 = vrot.slane %v3102_v56, 1  ;;  %v3719_v39 = vld [vmem:[%s4930_s4 + $0x78] sm:$0xff]   ;;  %v1426_v45 = vsel %vm1050_vm1, %v4327_v2, %v1425_v17 }
 0x1c0   : > { %v1197_v27 = vrot.slane %v1195_v13, 7  ;;  %v1154_v33 = vsel %vm1148_vm3, %v1115_v35, %v1080_v0  ;;  %v1184_v46 = vrot.slane %v1182_v5, 7  ;;  %v2023_v13 = vshrl.u32 %v4511_v61, 16 }
 0x1c1   : > { %v1192_v37 = vshrl.u32 %v1154_v33, 16  ;;  %2120 = vrot.lane.b32.xlu0 %v2091_v40, %s3827_s28  ;;  %v1086_v51 = vpop.permute.xlu1 %1085  ;;  %v3037_v33 = vld [vmem:[%s4152_s22 + $0xd0] sm:$0x1] }
 0x1c2   : > { %v1200_v14 = vor.u32 %v1198_v36, %v1197_v27  ;;  %v1191_v44 = vsel %vm1181_vm4, %v1184_v46, %v1190_v52  ;;  %v1160_v7 = vsel %vm1148_vm3, %v1122_v53, %v1086_v51  ;;  %v1428_v53 = vrot.slane %v3037_v33, 1 }
 0x1c3   : > { %v1194_v28 = vrot.slane %v1192_v37, 7  ;;  %v1017_v54 = vpop.permute.xlu0 %1016  ;;  %2114 = vrot.lane.b32.xlu1 %v4311_v57, %s3827_s28  ;;  %3436 = vmatprep.mubr.msk.bf16.mxu0 %vm1663_vm5, %v1191_v44  ;;  %v1205_v42 = vshrl.u32 %v1160_v7, 16  ;;  %v1208_v40 = vshll.u32 %v1160_v7, 16  ;;  %v930_v7 = vld [vmem:[%s4152_s22 + $0x60] sm:$0x80] }
 0x1c4   : > { %v1127_v29 = vsel %vm1107_vm2, %v4182_v3, %v1017_v54 }
 0x1c5   : > { %1446 = vrot.lane.b32.xlu0 %v4281_v25, %s3827_s28  ;;  %v1201_v32 = vsel %vm1181_vm4, %v1194_v28, %v1200_v14  ;;  %v1090_v47 = vpop.permute.xlu1 %1089  ;;  %v1207_v23 = vrot.slane %v1205_v42, 7  ;;  %v2094_v14 = vsel %vm1050_vm1, %v4529_v22, %v2093_v8  ;;  %v3721_v28 = vld [vmem:[%s4930_s4 + $0x80] sm:$0xff]  }
 0x1c6   : > { %3437 = vmatmul.mubr.msk.bf16.vlgmr.msra.gmra.mrb[0].mxu0 %vm1663_vm5, %v1201_v32  ;;  %v1164_v62 = vsel %vm1148_vm3, %v1127_v29, %v1090_v47  ;;  %v3103_v29 = vld [vmem:[%s4152_s22 + $0xe8] sm:$0x1] }
 0x1c7   : > { %v3654_v43 = vpop.permute.xlu0 %3653  ;;  %3453 = vmatpush3.bf16.msra.mxu0 %v4342_v9  ;;  %v1215_v25 = vshrl.u32 %v1164_v62, 16  ;;  %2118 = vrot.lane.b32.xlu1 %v4327_v2, %s3827_s28  ;;  %v2020_v9 = vshll.u32 %v4511_v61, 16  ;;  %v1218_v5 = vshll.u32 %v1164_v62, 16  ;;  %v1210_v34 = vor.u32 %v1208_v40, %v1207_v23 }
 0x1c8   : > { %v3656_v4 = vunpack.i.h.bf16 %v3654_v43  ;;  %3454 = vmatprep.subr.bf16.mxu0 %v3715_v31  ;;  %v3655_v15 = vunpack.i.l.bf16 %v3654_v43  ;;  %v1429_v62 = vsel %vm1050_vm1, %v4529_v22, %v1428_v53  ;;  %v3697_v43 = vpack.i.bf16 %v4497_v55, %v4313_v60 }
 0x1c9   : > { %1450 = vrot.lane.b32.xlu0 %v4311_v57, %s3827_s28  ;;  %v1088_v19 = vpop.permute.xlu1 %1087  ;;  %v1217_v30 = vrot.slane %v1215_v25, 7  ;;  %v4543_v0 = vrot.slane %v2020_v9, 1 }
 0x1ca   : > { %v1125_v21 = vsel %vm1107_vm2, %v928_v63, %v3656_v4  ;;  %v1120_v26 = vsel %vm1107_vm2, %v926_v6, %v3655_v15  ;;  %v3723_v63 = vld [vmem:[%s4930_s4 + $0x88] sm:$0xff]   ;;  %v2095_v6 = vrot.slane %v4511_v61, 1 }
 0x1cb   : > { %v1162_v24 = vsel %vm1148_vm3, %v1125_v21, %v1088_v19  ;;  %v1084_v48 = vpop.permute.xlu0 %1083  ;;  %3455 = vmatpush3.bf16.msra.mxu0 %v3715_v31  ;;  %2052 = vrot.lane.b32.xlu1 %v2018_v10, %s3828_s18  ;;  %v1220_v52 = vor.u32 %v1218_v5, %v1217_v30  ;;  %v2025_v51 = vor.u32 %v2023_v13, %v4543_v0  ;;  %v932_v21 = vld [vmem:[%s4152_s22 + $0x78] sm:$0x80] }
 0x1cc   : > { %v1212_v57 = vshrl.u32 %v1162_v24, 16  ;;  %v1158_v35 = vsel %vm1148_vm3, %v1120_v26, %v1084_v48  ;;  %3456 = vmatprep.subr.bf16.mxu0 %v3717_v12  ;;  %v3702_v23 = vpack.i.bf16 %v4543_v0, %v4497_v55 }
 0x1cd   : > { %v1202_v41 = vshrl.u32 %v1158_v35, 16  ;;  %1384 = vrot.lane.b32.xlu0 %v4324_v1, %s3828_s18  ;;  %v1025_v36 = vpop.permute.xlu1 %1024 }
 0x1ce   : > { %v1214_v27 = vrot.slane %v1212_v57, 7  ;;  %v1137_v25 = vsel %vm1107_vm2, %v4217_v18, %v1025_v36 }
 0x1cf   : > { %v1204_v37 = vrot.slane %v1202_v41, 7  ;;  %v1021_v46 = vpop.permute.xlu0 %1020  ;;  %3457 = vmatpush3.bf16.msra.mxu0 %v3717_v12  ;;  %1456 = vrot.lane.b32.xlu1 %v1426_v45, %s3827_s28 }
 0x1d0   : > { %3458 = vmatprep.subr.bf16.mxu0 %v3719_v39  ;;  %v1221_v44 = vsel %vm1181_vm4, %v1214_v27, %v1220_v52  ;;  %v1132_v16 = vsel %vm1107_vm2, %v4199_v11, %v1021_v46 }
 0x1d1   : > { %1388 = vrot.lane.b32.xlu0 %v2018_v10, %s3828_s18  ;;  %v1211_v1 = vsel %vm1181_vm4, %v1204_v37, %v1210_v34  ;;  %v3659_v54 = vpop.permute.xlu1 %3658  ;;  %v2096_v10 = vrot.slane %v3103_v29, 1 }
 0x1d2   : > { %3440 = vmatprep.mubr.msk.bf16.mxu0 %vm1663_vm5, %v1211_v1  ;;  %v3660_v31 = vunpack.i.l.bf16 %v3659_v54  ;;  %v3661_v56 = vunpack.i.h.bf16 %v3659_v54 }
 0x1d3   : > { %v1094_v32 = vpop.permute.xlu0 %1093  ;;  %3441 = vmatmul.mubr.msk.bf16.gmra.mrb[4].mxu0 %vm1663_vm5, %v1221_v44  ;;  %2124 = vrot.lane.b32.xlu1 %v2094_v14, %s3827_s28  ;;  %v2097_v30 = vsel %vm1050_vm1, %v2095_v6, %v2096_v10  ;;  %v936_v14 = vld [vmem:[%s4152_s22 + $0xa8] sm:$0x80] }
 0x1d4   : > { %v1168_v47 = vsel %vm1148_vm3, %v1132_v16, %v1094_v32  ;;  %3459 = vmatpush3.bf16.msra.mxu0 %v3719_v39  ;;  %v1130_v42 = vsel %vm1107_vm2, %v930_v7, %v3660_v31  ;;  %v1135_v35 = vsel %vm1107_vm2, %v932_v21, %v3661_v56 }
 0x1d5   : > { %v1225_v58 = vshrl.u32 %v1168_v47, 16  ;;  %2056 = vrot.lane.b32.xlu0 %v2025_v51, %s3828_s18  ;;  %3460 = vmatprep.subr.bf16.mxu0 %v3721_v28  ;;  %v1092_v4 = vpop.permute.xlu1 %1091  ;;  %v1228_v15 = vshll.u32 %v1168_v47, 16 }
 0x1d6   : > { %v1166_v17 = vsel %vm1148_vm3, %v1130_v42, %v1092_v4 }
 0x1d7   : > { %v1227_v12 = vrot.slane %v1225_v58, 7  ;;  %v1098_v9 = vpop.permute.xlu0 %1097  ;;  %v1222_v19 = vshrl.u32 %v1166_v17, 16  ;;  %1460 = vrot.lane.b32.xlu1 %v1429_v62, %s3827_s28 }
 0x1d8   : > { %v1172_v60 = vsel %vm1148_vm3, %v1137_v25, %v1098_v9  ;;  %3461 = vmatpush3.bf16.msra.mxu0 %v3721_v28  ;;  %v934_v28 = vld [vmem:[%s4152_s22 + $0x90] sm:$0x80] }
 0x1d9   : > { %v1230_v24 = vor.u32 %v1228_v15, %v1227_v12  ;;  %v1235_v48 = vshrl.u32 %v1172_v60, 16  ;;  %3698 = vrot.lane.b32.xlu0 %v3697_v43, %s3828_s18  ;;  %3462 = vmatprep.subr.bf16.mxu0 %v3723_v63  ;;  %v1224_v26 = vrot.slane %v1222_v19, 7  ;;  %v1029_v8 = vpop.permute.xlu1 %1028  ;;  %v1238_v40 = vshll.u32 %v1172_v60, 16 }
 0x1da   : > { %v1142_v5 = vsel %vm1107_vm2, %v4221_v20, %v1029_v8 }
 0x1db   : > { %v1237_v57 = vrot.slane %v1235_v48, 7  ;;  %v1096_v13 = vpop.permute.xlu0 %1095  ;;  %3703 = vrot.lane.b32.xlu1 %v3702_v23, %s3828_s18  ;;  %v1231_v55 = vsel %vm1181_vm4, %v1224_v26, %v1230_v24 }
 0x1dc   : > { %v1170_v39 = vsel %vm1148_vm3, %v1135_v35, %v1096_v13  ;;  %3463 = vmatpush3.bf16.msra.mxu0 %v3723_v63  ;;  %3444 = vmatprep.mubr.msk.bf16.mxu0 %vm1663_vm5, %v1231_v55 }
 0x1dd   : > { %v1232_v41 = vshrl.u32 %v1170_v39, 16  ;;  %2128 = vrot.lane.b32.xlu0 %v2097_v30, %s3827_s28  ;;  %v1102_v45 = vpop.permute.xlu1 %1101  ;;  %v1240_v0 = vor.u32 %v1238_v40, %v1237_v57  ;;  %v3080_v40 = vld [vmem:[%s4152_s22 + $0x30] sm:$0x80] }
 0x1de   : > { %v1176_v33 = vsel %vm1148_vm3, %v1142_v5, %v1102_v45 }
 0x1df   : > { %v1234_v27 = vrot.slane %v1232_v41, 7  ;;  %v1033_v36 = vpop.permute.xlu0 %1032  ;;  %2122 = vrot.lane.b32.xlu1 %v4529_v22, %s3827_s28  ;;  %v1245_v20 = vshrl.u32 %v1176_v33, 16  ;;  %v1248_v42 = vshll.u32 %v1176_v33, 16 }
 0x1e0   : > { %v1147_v37 = vsel %vm1107_vm2, %v4291_v50, %v1033_v36 }
 0x1e1   : > { %1454 = vrot.lane.b32.xlu0 %v4327_v2, %s3827_s28  ;;  %v1241_v34 = vsel %vm1181_vm4, %v1234_v27, %v1240_v0  ;;  %v1106_v46 = vpop.permute.xlu1 %1105  ;;  %v1247_v7 = vrot.slane %v1245_v20, 7  ;;  %v3014_v0 = vld [vmem:[%s4152_s22 + $0x18] sm:$0x80] }
 0x1e2   : > { %3445 = vmatmul.mubr.msk.bf16.gmra.mrb[8].mxu0 %vm1663_vm5, %v1241_v34  ;;  %v1180_v52 = vsel %vm1148_vm3, %v1147_v37, %v1106_v46 }
 0x1e3   : > { %v3664_v1 = vpop.permute.xlu0 %3663  ;;  %v1255_v51 = vshrl.u32 %v1180_v52, 16  ;;  %2126 = vrot.lane.b32.xlu1 %v2095_v6, %s3827_s28  ;;  %v1258_v43 = vshll.u32 %v1180_v52, 16  ;;  %v1250_v4 = vor.u32 %v1248_v42, %v1247_v7 }
 0x1e4   : > { %v3666_v53 = vunpack.i.h.bf16 %v3664_v1  ;;  %v3665_v54 = vunpack.i.l.bf16 %v3664_v1 }
 0x1e5   : > { %1458 = vrot.lane.b32.xlu0 %v4529_v22, %s3827_s28  ;;  %v1104_v2 = vpop.permute.xlu1 %1103  ;;  %v1257_v29 = vrot.slane %v1255_v51, 7  ;;  %v3082_v51 = vld [vmem:[%s4152_s22 + $0x48] sm:$0x80] }
 0x1e6   : > { %v1145_v44 = vsel %vm1107_vm2, %v936_v14, %v3666_v53  ;;  %v1140_v32 = vsel %vm1107_vm2, %v934_v28, %v3665_v54 }
 0x1e7   : > { %v1178_v16 = vsel %vm1148_vm3, %v1145_v44, %v1104_v2  ;;  %v1100_v31 = vpop.permute.xlu0 %1099  ;;  %v1260_v10 = vor.u32 %v1258_v43, %v1257_v29  ;;  %v3016_v2 = vld [vmem:[%s4152_s22 + $0x30] sm:$0x80] }
 0x1e8   : > { %v1252_v47 = vshrl.u32 %v1178_v16, 16  ;;  %v1174_v58 = vsel %vm1148_vm3, %v1140_v32, %v1100_v31 }
 0x1e9   : > { %v1242_v62 = vshrl.u32 %v1174_v58, 16  ;;  %v2029_v25 = vpop.permute.xlu1 %2028 }
 0x1ea   : > { %v1254_v63 = vrot.slane %v1252_v47, 7  ;;  %v2134_v21 = vsel %vm1107_vm2, %v4170_v59, %v2029_v25 }
 0x1eb   : > { %v1244_v22 = vrot.slane %v1242_v62, 7  ;;  %v1361_v6 = vpop.permute.xlu0 %1360 }
 0x1ec   : > { %v1261_v15 = vsel %vm1181_vm4, %v1254_v63, %v1260_v10  ;;  %v1466_v60 = vsel %vm1107_vm2, %v4158_v49, %v1361_v6 }
 0x1ed   : > { %v1251_v56 = vsel %vm1181_vm4, %v1244_v22, %v1250_v4  ;;  %v1433_v12 = vpop.permute.xlu1 %1432 }
 0x1ee   : > { %3448 = vmatprep.mubr.msk.bf16.mxu0 %vm1663_vm5, %v1251_v56  ;;  %v1505_v23 = vsel %vm1148_vm3, %v1466_v60, %v1433_v12 }
 0x1ef   : > { %v1365_v17 = vpop.permute.xlu0 %1364  ;;  %3449 = vmatmul.mubr.msk.bf16.gmra.mrb[12].mxu0 %vm1663_vm5, %v1261_v15  ;;  %v1537_v8 = vshrl.u32 %v1505_v23, 16  ;;  %v1540_v27 = vshll.u32 %v1505_v23, 16 }
 0x1f0   : > { %v1471_v13 = vsel %vm1107_vm2, %v4170_v59, %v1365_v17 }
 0x1f1   : > { %v2101_v9 = vpop.permute.xlu1 %2100  ;;  %v1539_v5 = vrot.slane %v1537_v8, 7 }
 0x1f2   : > { %v2173_v48 = vsel %vm1148_vm3, %v2134_v21, %v2101_v9 }
 0x1f3   : > { %v2033_v19 = vpop.permute.xlu0 %2032  ;;  %v2205_v30 = vshrl.u32 %v2173_v48, 16  ;;  %v2208_v53 = vshll.u32 %v2173_v48, 16  ;;  %v1542_v44 = vor.u32 %v1540_v27, %v1539_v5 }
 0x1f4   : > { %v2139_v49 = vsel %vm1107_vm2, %v4182_v3, %v2033_v19 }
 0x1f5   : > { %v1437_v24 = vpop.permute.xlu1 %1436  ;;  %v2207_v36 = vrot.slane %v2205_v30, 7 }
 0x1f6   : > { %v1509_v41 = vsel %vm1148_vm3, %v1471_v13, %v1437_v24 }
 0x1f7   : > { %v3669_v26 = vpop.permute.xlu0 %3668  ;;  %v1547_v46 = vshrl.u32 %v1509_v41, 16  ;;  %v2210_v16 = vor.u32 %v2208_v53, %v2207_v36  ;;  %v1550_v10 = vshll.u32 %v1509_v41, 16 }
 0x1f8   : > { %v3671_v57 = vunpack.i.h.bf16 %v3669_v26  ;;  %v3670_v39 = vunpack.i.l.bf16 %v3669_v26 }
 0x1f9   : > { %v3674_v35 = vpop.permute.xlu1 %3673  ;;  %v1549_v58 = vrot.slane %v1547_v46, 7 }
 0x1fa   : > { %v3676_v33 = vunpack.i.h.bf16 %v3674_v35  ;;  %v2132_v59 = vsel %vm1107_vm2, %v3080_v40, %v3671_v57  ;;  %v3675_v20 = vunpack.i.l.bf16 %v3674_v35  ;;  %v1464_v14 = vsel %vm1107_vm2, %v3014_v0, %v3670_v39 }
 0x1fb   : > { %v2105_v55 = vpop.permute.xlu0 %2104  ;;  %v1552_v19 = vor.u32 %v1550_v10, %v1549_v58 }
 0x1fc   : > { %v2177_v45 = vsel %vm1148_vm3, %v2139_v49, %v2105_v55  ;;  %v2137_v47 = vsel %vm1107_vm2, %v3082_v51, %v3676_v33  ;;  %v1469_v43 = vsel %vm1107_vm2, %v3016_v2, %v3675_v20  ;;  %v3084_v33 = vld [vmem:[%s4152_s22 + $0x60] sm:$0x80] }
 0x1fd   : > { %v2215_v34 = vshrl.u32 %v2177_v45, 16  ;;  %v2099_v37 = vpop.permute.xlu1 %2098  ;;  %v2218_v25 = vshll.u32 %v2177_v45, 16 }
 0x1fe   : > { %v2171_v52 = vsel %vm1148_vm3, %v2132_v59, %v2099_v37  ;;  %v3018_v59 = vld [vmem:[%s4152_s22 + $0x48] sm:$0x80] }
 0x1ff   : > { %v1431_v1 = vpop.permute.xlu0 %1430  ;;  %v2202_v28 = vshrl.u32 %v2171_v52, 16  ;;  %v2217_v31 = vrot.slane %v2215_v34, 7 }
 0x200   : > { %v1503_v54 = vsel %vm1148_vm3, %v1464_v14, %v1431_v1 }
 0x201   : > { %v1534_v7 = vshrl.u32 %v1503_v54, 16  ;;  %v2204_v32 = vrot.slane %v2202_v28, 7  ;;  %v2103_v29 = vpop.permute.xlu1 %2102  ;;  %v2220_v15 = vor.u32 %v2218_v25, %v2217_v31 }
 0x202   : > { %v2175_v62 = vsel %vm1148_vm3, %v2137_v47, %v2103_v29 }
 0x203   : > { %v1536_v42 = vrot.slane %v1534_v7, 7  ;;  %v1435_v63 = vpop.permute.xlu0 %1434  ;;  %v2212_v4 = vshrl.u32 %v2175_v62, 16  ;;  %v2211_v6 = vsel %vm1181_vm4, %v2204_v32, %v2210_v16  ;;  %v3020_v32 = vld [vmem:[%s4152_s22 + $0x60] sm:$0x80] }
 0x204   : > { %v1507_v22 = vsel %vm1148_vm3, %v1469_v43, %v1435_v63  ;;  %3464 = vmatprep.mubr.msk.bf16.mxu0 %vm1663_vm5, %v2211_v6 }
 0x205   : > { %v1544_v56 = vshrl.u32 %v1507_v22, 16  ;;  %v1543_v12 = vsel %vm1181_vm4, %v1536_v42, %v1542_v44  ;;  %v2214_v17 = vrot.slane %v2212_v4, 7  ;;  %v2037_v9 = vpop.permute.xlu1 %2036  ;;  %v3086_v44 = vld [vmem:[%s4152_s22 + $0x78] sm:$0x80] }
 0x206   : > { %3408 = vmatprep.mubr.msk.bf16.mxu1 %vm1663_vm5, %v1543_v12  ;;  %v2144_v35 = vsel %vm1107_vm2, %v4199_v11, %v2037_v9 }
 0x207   : > { %v1546_v60 = vrot.slane %v1544_v56, 7  ;;  %v1369_v21 = vpop.permute.xlu0 %1368  ;;  %v2221_v23 = vsel %vm1181_vm4, %v2214_v17, %v2220_v15 }
 0x208   : > { %3465 = vmatmul.mubr.msk.bf16.vlgmr.msra.gmra.mrb[0].mxu0 %vm1663_vm5, %v2221_v23  ;;  %v1476_v57 = vsel %vm1107_vm2, %v4182_v3, %v1369_v21 }
 0x209   : > { %v1553_v24 = vsel %vm1181_vm4, %v1546_v60, %v1552_v19  ;;  %v1441_v48 = vpop.permute.xlu1 %1440 }
 0x20a   : > { %3409 = vmatmul.mubr.msk.bf16.vlgmr.msra.gmra.mrb[0].mxu1 %vm1663_vm5, %v1553_v24  ;;  %v1513_v13 = vsel %vm1148_vm3, %v1476_v57, %v1441_v48 }
 0x20b   : > { %v1373_v26 = vpop.permute.xlu0 %1372  ;;  %v1557_v40 = vshrl.u32 %v1513_v13, 16  ;;  %v1560_v20 = vshll.u32 %v1513_v13, 16 }
 0x20c   : > { %v1481_v5 = vsel %vm1107_vm2, %v4199_v11, %v1373_v26 }
 0x20d   : > { %v2109_v8 = vpop.permute.xlu1 %2108  ;;  %v1559_v46 = vrot.slane %v1557_v40, 7 }
 0x20e   : > { %v2181_v39 = vsel %vm1148_vm3, %v2144_v35, %v2109_v8 }
 0x20f   : > { %v2041_v30 = vpop.permute.xlu0 %2040  ;;  %v2225_v41 = vshrl.u32 %v2181_v39, 16  ;;  %v2228_v7 = vshll.u32 %v2181_v39, 16  ;;  %v1562_v29 = vor.u32 %v1560_v20, %v1559_v46 }
 0x210   : > { %v2149_v3 = vsel %vm1107_vm2, %v4217_v18, %v2041_v30 }
 0x211   : > { %v1445_v49 = vpop.permute.xlu1 %1444  ;;  %v2227_v52 = vrot.slane %v2225_v41, 7  ;;  %v3728_v41 = vld [vmem:[%s4152_s22 + $0x98] sm:$0xff] }
 0x212   : > { %v1517_v34 = vsel %vm1148_vm3, %v1481_v5, %v1445_v49 }
 0x213   : > { %v3679_v55 = vpop.permute.xlu0 %3678  ;;  %v1567_v53 = vshrl.u32 %v1517_v34, 16  ;;  %v2230_v58 = vor.u32 %v2228_v7, %v2227_v52  ;;  %v1570_v9 = vshll.u32 %v1517_v34, 16 }
 0x214   : > { %v3681_v45 = vunpack.i.h.bf16 %v3679_v55  ;;  %v3680_v27 = vunpack.i.l.bf16 %v3679_v55  ;;  %v3727_v55 = vld [vmem:[%s4152_s22 + $0x80] sm:$0xff] }
 0x215   : > { %v3684_v0 = vpop.permute.xlu1 %3683  ;;  %v1569_v25 = vrot.slane %v1567_v53, 7 }
 0x216   : > { %v3686_v1 = vunpack.i.h.bf16 %v3684_v0  ;;  %v2142_v11 = vsel %vm1107_vm2, %v3084_v33, %v3681_v45  ;;  %v3685_v18 = vunpack.i.l.bf16 %v3684_v0  ;;  %v1474_v2 = vsel %vm1107_vm2, %v3018_v59, %v3680_v27 }
 0x217   : > { %v2113_v36 = vpop.permute.xlu0 %2112  ;;  %v1572_v48 = vor.u32 %v1570_v9, %v1569_v25 }
 0x218   : > { %v2185_v37 = vsel %vm1148_vm3, %v2149_v3, %v2113_v36  ;;  %v2147_v63 = vsel %vm1107_vm2, %v3086_v44, %v3686_v1  ;;  %v1479_v6 = vsel %vm1107_vm2, %v3020_v32, %v3685_v18  ;;  %v3088_v1 = vld [vmem:[%s4152_s22 + $0x90] sm:$0x80] }
 0x219   : > { %v2235_v14 = vshrl.u32 %v2185_v37, 16  ;;  %v2107_v51 = vpop.permute.xlu1 %2106  ;;  %v2238_v56 = vshll.u32 %v2185_v37, 16 }
 0x21a   : > { %v2179_v28 = vsel %vm1148_vm3, %v2142_v11, %v2107_v51  ;;  %v3022_v11 = vld [vmem:[%s4152_s22 + $0x78] sm:$0x80] }
 0x21b   : > { %v1439_v54 = vpop.permute.xlu0 %1438  ;;  %v2222_v16 = vshrl.u32 %v2179_v28, 16  ;;  %v2237_v42 = vrot.slane %v2235_v14, 7 }
 0x21c   : > { %v1511_v31 = vsel %vm1148_vm3, %v1474_v2, %v1439_v54 }
 0x21d   : > { %v1554_v47 = vshrl.u32 %v1511_v31, 16  ;;  %v2224_v62 = vrot.slane %v2222_v16, 7  ;;  %v2111_v43 = vpop.permute.xlu1 %2110  ;;  %v2240_v21 = vor.u32 %v2238_v56, %v2237_v42 }
 0x21e   : > { %v2183_v22 = vsel %vm1148_vm3, %v2147_v63, %v2111_v43  ;;  %v3024_v43 = vld [vmem:[%s4152_s22 + $0x90] sm:$0x80] }
 0x21f   : > { %v1556_v4 = vrot.slane %v1554_v47, 7  ;;  %v1443_v10 = vpop.permute.xlu0 %1442  ;;  %v2232_v12 = vshrl.u32 %v2183_v22, 16  ;;  %v2231_v17 = vsel %vm1181_vm4, %v2224_v62, %v2230_v58  ;;  %v3090_v47 = vld [vmem:[%s4152_s22 + $0xa8] sm:$0x80] }
 0x220   : > { %v1515_v15 = vsel %vm1148_vm3, %v1479_v6, %v1443_v10  ;;  %3468 = vmatprep.mubr.msk.bf16.mxu0 %vm1663_vm5, %v2231_v17 }
 0x221   : > { %v1564_v19 = vshrl.u32 %v1515_v15, 16  ;;  %v1563_v60 = vsel %vm1181_vm4, %v1556_v4, %v1562_v29  ;;  %v2234_v23 = vrot.slane %v2232_v12, 7  ;;  %v2045_v24 = vpop.permute.xlu1 %2044 }
 0x222   : > { %3412 = vmatprep.mubr.msk.bf16.mxu1 %vm1663_vm5, %v1563_v60  ;;  %v2154_v45 = vsel %vm1107_vm2, %v3728_v41, %v2045_v24 }
 0x223   : > { %v1566_v26 = vrot.slane %v1564_v19, 7  ;;  %v1377_v8 = vpop.permute.xlu0 %1376  ;;  %v2241_v30 = vsel %vm1181_vm4, %v2234_v23, %v2240_v21 }
 0x224   : > { %3469 = vmatmul.mubr.msk.bf16.gmra.mrb[4].mxu0 %vm1663_vm5, %v2241_v30  ;;  %v1486_v40 = vsel %vm1107_vm2, %v3727_v55, %v1377_v8 }
 0x225   : > { %v1573_v57 = vsel %vm1181_vm4, %v1566_v26, %v1572_v48  ;;  %v1449_v35 = vpop.permute.xlu1 %1448 }
 0x226   : > { %3413 = vmatmul.mubr.msk.bf16.gmra.mrb[4].mxu1 %vm1663_vm5, %v1573_v57  ;;  %v1521_v0 = vsel %vm1148_vm3, %v1486_v40, %v1449_v35 }
 0x227   : > { %v1381_v13 = vpop.permute.xlu0 %1380  ;;  %v1577_v36 = vshrl.u32 %v1521_v0, 16  ;;  %v1580_v18 = vshll.u32 %v1521_v0, 16 }
 0x228   : > { %v1491_v59 = vsel %vm1107_vm2, %v3728_v41, %v1381_v13 }
 0x229   : > { %v2117_v49 = vpop.permute.xlu1 %2116  ;;  %v1579_v53 = vrot.slane %v1577_v36, 7 }
 0x22a   : > { %v2189_v3 = vsel %vm1148_vm3, %v2154_v45, %v2117_v49 }
 0x22b   : > { %v2049_v39 = vpop.permute.xlu0 %2048  ;;  %v2245_v33 = vshrl.u32 %v2189_v3, 16  ;;  %v2248_v58 = vshll.u32 %v2189_v3, 16  ;;  %v1582_v63 = vor.u32 %v1580_v18, %v1579_v53  ;;  %v3729_v3 = vld [vmem:[%s4152_s22 + $0xb0] sm:$0xff]  ;;  %v3092_v18 = vld [vmem:[%s4152_s22 + $0xc0] sm:$0x80] }
 0x22c   : > { %v2159_v46 = vsel %vm1107_vm2, %v4291_v50, %v2049_v39 }
 0x22d   : > { %v1453_v5 = vpop.permute.xlu1 %1452  ;;  %v2247_v28 = vrot.slane %v2245_v33, 7 }
 0x22e   : > { %v1525_v14 = vsel %vm1148_vm3, %v1491_v59, %v1453_v5 }
 0x22f   : > { %v3689_v27 = vpop.permute.xlu0 %3688  ;;  %v1587_v16 = vshrl.u32 %v1525_v14, 16  ;;  %v2250_v4 = vor.u32 %v2248_v58, %v2247_v28  ;;  %v1590_v48 = vshll.u32 %v1525_v14, 16 }
 0x230   : > { %v3691_v34 = vunpack.i.h.bf16 %v3689_v27  ;;  %v3690_v20 = vunpack.i.l.bf16 %v3689_v27 }
 0x231   : > { %v3694_v37 = vpop.permute.xlu1 %3693  ;;  %v1589_v12 = vrot.slane %v1587_v16, 7 }
 0x232   : > { %v3696_v54 = vunpack.i.h.bf16 %v3694_v37  ;;  %v2152_v7 = vsel %vm1107_vm2, %v3088_v1, %v3691_v34  ;;  %v3695_v50 = vunpack.i.l.bf16 %v3694_v37  ;;  %v1484_v29 = vsel %vm1107_vm2, %v3022_v11, %v3690_v20 }
 0x233   : > { %v2121_v52 = vpop.permute.xlu0 %2120  ;;  %v1592_v13 = vor.u32 %v1590_v48, %v1589_v12 }
 0x234   : > { %v2193_v51 = vsel %vm1148_vm3, %v2159_v46, %v2121_v52  ;;  %v2157_v56 = vsel %vm1107_vm2, %v3090_v47, %v3696_v54  ;;  %v1489_v9 = vsel %vm1107_vm2, %v3024_v43, %v3695_v50 }
 0x235   : > { %v2255_v2 = vshrl.u32 %v2193_v51, 16  ;;  %v2115_v44 = vpop.permute.xlu1 %2114  ;;  %v2258_v60 = vshll.u32 %v2193_v51, 16 }
 0x236   : > { %v2187_v31 = vsel %vm1148_vm3, %v2152_v7, %v2115_v44 }
 0x237   : > { %v1447_v32 = vpop.permute.xlu0 %1446  ;;  %v2242_v42 = vshrl.u32 %v2187_v31, 16  ;;  %v2257_v22 = vrot.slane %v2255_v2, 7  ;;  %v3026_v2 = vld [vmem:[%s4152_s22 + $0xa8] sm:$0x80] }
 0x238   : > { %v1519_v62 = vsel %vm1148_vm3, %v1484_v29, %v1447_v32 }
 0x239   : > { %v1574_v25 = vshrl.u32 %v1519_v62, 16  ;;  %v2244_v6 = vrot.slane %v2242_v42, 7  ;;  %v2119_v10 = vpop.permute.xlu1 %2118  ;;  %v2260_v30 = vor.u32 %v2258_v60, %v2257_v22  ;;  %v3094_v62 = vld [vmem:[%s4152_s22 + $0xd8] sm:$0x80] }
 0x23a   : > { %v2191_v17 = vsel %vm1148_vm3, %v2157_v56, %v2119_v10 }
 0x23b   : > { %v1576_v15 = vrot.slane %v1574_v25, 7  ;;  %v1451_v19 = vpop.permute.xlu0 %1450  ;;  %v2252_v21 = vshrl.u32 %v2191_v17, 16  ;;  %v2251_v24 = vsel %vm1181_vm4, %v2244_v6, %v2250_v4  ;;  %v3028_v4 = vld [vmem:[%s4152_s22 + $0xc0] sm:$0x80]  ;;  %s3142_s22 = sshll.u32 %s3808_s16, 7 }
 0x23c   : > { %v1523_v23 = vsel %vm1148_vm3, %v1489_v9, %v1451_v19  ;;  %3472 = vmatprep.mubr.msk.bf16.mxu0 %vm1663_vm5, %v2251_v24  ;;  %s2676_s18 = sshra.s32 %s3142_s22, 3  ;;  %s3164_s22 = sshll.u32 %s3812_s17, 5 }
 0x23d   : > { %v1584_v26 = vshrl.u32 %v1523_v23, 16  ;;  %v1583_v8 = vsel %vm1181_vm4, %v1576_v15, %v1582_v63  ;;  %v2254_v57 = vrot.slane %v2252_v21, 7  ;;  %v2053_v35 = vpop.permute.xlu1 %2052  ;;  %s3143_s29 = sshll.u32 %s2676_s18, 2  ;;  %s2886_s17 = sshll.u32 %s3967_s25, 4  ;;  %s4866_s17 = int_to_ptr.vmem [resolvable:$true] %s2886_s17 }
 0x23e   : > { %3416 = vmatprep.mubr.msk.bf16.mxu1 %vm1663_vm5, %v1583_v8  ;;  %v2164_v36 = vsel %vm1107_vm2, %v4480_v38, %v2053_v35  ;;  %s4800_s30 = scalar_lea.vmem %s3965_s24, %s3143_s29  ;;  %s3163_s24 = sshll.u32 %s3808_s16, 4 }
 0x23f   : > { %v1586_v49 = vrot.slane %v1584_v26, 7  ;;  %v1385_v39 = vpop.permute.xlu0 %1384  ;;  %v2261_v55 = vsel %vm1181_vm4, %v2254_v57, %v2260_v30  ;;  %s2883_s18 = sadd.s32 %s3164_s22, %s3163_s24  ;;  %s3730_s12 = scalar_lea.vmem %s4866_s17, 1024 }
 0x240   : > { %3473 = vmatmul.mubr.msk.bf16.gmra.mrb[8].mxu0 %vm1663_vm5, %v2261_v55  ;;  %v1496_v27 = vsel %vm1107_vm2, %v3729_v3, %v1385_v39  ;;  %s3165_s16 = sshll.u32 %s2883_s18, 6  ;;  %p3731_p0 = scmp.ne.s32.totalorder %s4866_s17, %s3730_s12 }
 0x241   : > { %v1593_v40 = vsel %vm1181_vm4, %v1586_v49, %v1592_v13  ;;  %v1457_v41 = vpop.permute.xlu1 %1456  ;;  %s4864_s23 = scalar_lea.hbm %s4936_s10, %s3165_s16  ;;  %s3829_s24 = smov [#allocation3]  }
 0x242   : > { %3417 = vmatmul.mubr.msk.bf16.gmra.mrb[8].mxu1 %vm1663_vm5, %v1593_v40  ;;  %v1529_v33 = vsel %vm1148_vm3, %v1496_v27, %v1457_v41  ;;  %v4751_v27 = vld [vmem:[%s4931_s5] ss:$0 sm:$0xff]  ;;  %p3732_p1 = pnand %p3731_p0, %p3937_p3  ;;  %s3734_s22 = sshll.u32 %s3829_s24, 4  ;;  %s3735_s22 = int_to_ptr.vmem [resolvable:$false] %s3734_s22 }
 0x243   : > { %v1389_v45 = vpop.permute.xlu0 %1388  ;;  %v1597_v46 = vshrl.u32 %v1529_v33, 16  ;;  %v1600_v7 = vshll.u32 %v1529_v33, 16  ;;  %s3736_s18 = scalar_lea.vmem %s3735_s22, 2048  ;;  %p3737_p4 = scmp.lt.s32.totalorder %s4866_s17, %s3735_s22 }
 0x244   : > { %v1501_v14 = vsel %vm1107_vm2, %v4480_v38, %v1389_v45  ;;  %v3725_v45 = vld [vmem:[%s4933_s7] sm:$0xff]   ;;  %p3733_p2 = pneg %p3732_p1  ;;  %p3738_p5 = scmp.lt.s32.totalorder %s3736_s18, %s3730_s12 }
 0x245   : > { %v2125_v0 = vpop.permute.xlu1 %2124  ;;  %v1599_v44 = vrot.slane %v1597_v46, 7  ;;  %3480 = vmatprep.subr.bf16.mxu1 %v3725_v45 }
 0x246   : > { %v2197_v37 = vsel %vm1148_vm3, %v2164_v36, %v2125_v0  ;;  %3481 = vmatpush3.bf16.msra.mxu1 %v3725_v45  ;;  %v3726_v0 = vld [vmem:[%s4933_s7 + $0x8] sm:$0xff]   ;;  %p3739_p6 = por %p3738_p5, %p3737_p4 }
 0x247   : > { %v2057_v5 = vpop.permute.xlu0 %2056  ;;  %v2265_v20 = vshrl.u32 %v2197_v37, 16  ;;  %v2268_v43 = vshll.u32 %v2197_v37, 16  ;;  %v1602_v22 = vor.u32 %v1600_v7, %v1599_v44  ;;  %3482 = vmatprep.subr.bf16.mxu1 %v3726_v0 }
 0x248   : > { %v2169_v51 = vsel %vm1107_vm2, %v4511_v61, %v2057_v5  ;;  %p3740_p7 = pnand %p3739_p6, %p3733_p2 }
 0x249   : > { %v1461_v34 = vpop.permute.xlu1 %1460  ;;  %v2267_v16 = vrot.slane %v2265_v20, 7 }
 0x24a   : > { %v1533_v28 = vsel %vm1148_vm3, %v1501_v14, %v1461_v34  ;;  %3483 = vmatpush3.bf16.msra.mxu1 %v3726_v0 }
 0x24b   : > { %v3699_v59 = vpop.permute.xlu0 %3698  ;;  %v1607_v29 = vshrl.u32 %v1533_v28, 16  ;;  %v2270_v10 = vor.u32 %v2268_v43, %v2267_v16  ;;  %v1610_v30 = vshll.u32 %v1533_v28, 16 }
 0x24c   : > { %v3701_v52 = vunpack.i.h.bf16 %v3699_v59  ;;  %v3700_v11 = vunpack.i.l.bf16 %v3699_v59  ;;  %v4756_v59 = vld [vmem:[%s4932_s6] ss:$0 sm:$0xff] }
 0x24d   : > { %v3704_v1 = vpop.permute.xlu1 %3703  ;;  %v1609_v9 = vrot.slane %v1607_v29, 7 }
 0x24e   : > { %v3706_v50 = vunpack.i.h.bf16 %v3704_v1  ;;  %v2162_v38 = vsel %vm1107_vm2, %v3092_v18, %v3701_v52  ;;  %v3705_v61 = vunpack.i.l.bf16 %v3704_v1  ;;  %v1494_v42 = vsel %vm1107_vm2, %v3026_v2, %v3700_v11 }
 0x24f   : > { %v2129_v53 = vpop.permute.xlu0 %2128  ;;  %v1612_v39 = vor.u32 %v1610_v30, %v1609_v9 }
 0x250   : > { %v2201_v54 = vsel %vm1148_vm3, %v2169_v51, %v2129_v53  ;;  %v2167_v17 = vsel %vm1107_vm2, %v3094_v62, %v3706_v50  ;;  %v1499_v21 = vsel %vm1107_vm2, %v3028_v4, %v3705_v61 }
 0x251   : > { %v2275_v31 = vshrl.u32 %v2201_v54, 16  ;;  %v2123_v32 = vpop.permute.xlu1 %2122  ;;  %v2278_v24 = vshll.u32 %v2201_v54, 16 }
 0x252   : > { %v2195_v47 = vsel %vm1148_vm3, %v2162_v38, %v2123_v32 }
 0x253   : > { %v1455_v58 = vpop.permute.xlu0 %1454  ;;  %v2262_v63 = vshrl.u32 %v2195_v47, 16  ;;  %v2277_v56 = vrot.slane %v2275_v31, 7 }
 0x254   : > { %v1527_v25 = vsel %vm1148_vm3, %v1494_v42, %v1455_v58 }
 0x255   : > { %v1594_v6 = vshrl.u32 %v1527_v25, 16  ;;  %v2264_v12 = vrot.slane %v2262_v63, 7  ;;  %v2127_v15 = vpop.permute.xlu1 %2126  ;;  %v2280_v13 = vor.u32 %v2278_v24, %v2277_v56 }
 0x256   : > { %v2199_v60 = vsel %vm1148_vm3, %v2167_v17, %v2127_v15 }
 0x257   : > { %v1596_v19 = vrot.slane %v1594_v6, 7  ;;  %v1459_v23 = vpop.permute.xlu0 %1458  ;;  %v2272_v48 = vshrl.u32 %v2199_v60, 16  ;;  %v2271_v8 = vsel %vm1181_vm4, %v2264_v12, %v2270_v10 }
 0x258   : > { %v1531_v26 = vsel %vm1148_vm3, %v1499_v21, %v1459_v23  ;;  %3476 = vmatprep.mubr.msk.bf16.mxu0 %vm1663_vm5, %v2271_v8 }
 0x259   : > { %v1604_v57 = vshrl.u32 %v1531_v26, 16  ;;  %v1603_v35 = vsel %vm1181_vm4, %v1596_v19, %v1602_v22  ;;  %v2274_v49 = vrot.slane %v2272_v48, 7 }
 0x25a   : > { %3420 = vmatprep.mubr.msk.bf16.mxu1 %vm1663_vm5, %v1603_v35 }
 0x25b   : > { %v1606_v55 = vrot.slane %v1604_v57, 7  ;;  %v2281_v40 = vsel %vm1181_vm4, %v2274_v49, %v2280_v13 }
 0x25c   : > { %3477 = vmatmul.mubr.msk.bf16.gmra.mrb[12].mxu0 %vm1663_vm5, %v2281_v40 }
 0x25d   : > { %v1613_v41 = vsel %vm1181_vm4, %v1606_v55, %v1612_v39 }
 0x25e   : > { %3421 = vmatmul.mubr.msk.bf16.gmra.mrb[12].mxu1 %vm1663_vm5, %v1613_v41 }
 0x2db   : > { %v3466_v5 = vpop.f32.mrb[0].mxu0 }
 0x2dc   : > { %v2389_v36 = vpop.f32.mrb[1].mxu0 }
 0x2dd   : > { %v3410_v3 = vpop.f32.mrb[0].mxu1  ;;  %v3467_v37 = vpop.f32.mrb[2].mxu0 }
 0x2de   : > { %v3516_v33 = vadd.f32 %v3466_v5, %v3410_v3  ;;  %v1722_v34 = vpop.f32.mrb[1].mxu1  ;;  %v2392_v52 = vpop.f32.mrb[3].mxu0 }
 0x2df   : > { %v3517_v46 = vadd.f32 %v2389_v36, %v1722_v34  ;;  %v3411_v20 = vpop.f32.mrb[2].mxu1 }
 0x2e0   : > { %v2477_v1 = vmul.f32 %v3516_v33, %v4751_v27  ;;  %v3518_v14 = vadd.f32 %v3467_v37, %v3411_v20  ;;  %v1725_v51 = vpop.f32.mrb[3].mxu1 }
 0x2e1   : > { %v2475_v11 = vmul.f32 %v3517_v46, %v4751_v27  ;;  %v3519_v53 = vadd.f32 %v2392_v52, %v1725_v51 }
 0x2e2   : > { %v2500_v18 = vadd.f32 %v4756_v59, %v2477_v1  ;;  %v2478_v28 = vmul.f32 %v3518_v14, %v4751_v27 }
 0x2e3   : > { %v2498_v54 = vadd.f32 %v4756_v59, %v2475_v11  ;;  %v2476_v2 = vmul.f32 %v3519_v53, %v4751_v27 }
 0x2e4   : > { %v2501_v44 = vadd.f32 %v4756_v59, %v2478_v28  ;;  %v2516_v16 = vmax.f32 %v2500_v18, 0.0 }
 0x2e5   : > { %v2499_v7 = vadd.f32 %v4756_v59, %v2476_v2  ;;  %v2514_v31 = vmax.f32 %v2498_v54, 0.0 }
 0x2e6   : > { %v2517_v50 = vmax.f32 %v2501_v44, 0.0 }
 0x2e7   : > { %v2515_v32 = vmax.f32 %v2499_v7, 0.0 }
 0x2e8   : > { %v2531_v38 = vpack.c.bf16 %v2517_v50, %v2516_v16 }
 0x2e9   : > { %v2530_v29 = vpack.c.bf16 %v2515_v32, %v2514_v31 }
 0x2eb   : > { %3484 = vmatprep.mubr.msk.bf16.mxu1 %vm1107_vm2, %v2530_v29 }
 0x2ec   : > { %3485 = vmatmul.mubr.msk.bf16.vlgmr.msra.gmra.mrb[16].mxu1 %vm1107_vm2, %v2531_v38 }
 0x2f7   : > { %v3470_v61 = vpop.f32.mrb[4].mxu0 }
 0x2f8   : > { %v2405_v58 = vpop.f32.mrb[5].mxu0 }
 0x2f9   : > { %v3414_v47 = vpop.f32.mrb[4].mxu1  ;;  %v3471_v43 = vpop.f32.mrb[6].mxu0 }
 0x2fa   : > { %v3520_v42 = vadd.f32 %v3470_v61, %v3414_v47  ;;  %v1738_v62 = vpop.f32.mrb[5].mxu1  ;;  %v2408_v4 = vpop.f32.mrb[7].mxu0 }
 0x2fb   : > { %v3521_v63 = vadd.f32 %v2405_v58, %v1738_v62  ;;  %v3415_v25 = vpop.f32.mrb[6].mxu1 }
 0x2fc   : > { %v2481_v22 = vmul.f32 %v3520_v42, %v4751_v27  ;;  %v3522_v6 = vadd.f32 %v3471_v43, %v3415_v25  ;;  %v1741_v10 = vpop.f32.mrb[7].mxu1 }
 0x2fd   : > { %v2479_v56 = vmul.f32 %v3521_v63, %v4751_v27  ;;  %v3523_v12 = vadd.f32 %v2408_v4, %v1741_v10 }
 0x2fe   : > { %v2504_v15 = vadd.f32 %v4756_v59, %v2481_v22  ;;  %v2482_v17 = vmul.f32 %v3522_v6, %v4751_v27 }
 0x2ff   : > { %v2502_v9 = vadd.f32 %v4756_v59, %v2479_v56  ;;  %v2480_v19 = vmul.f32 %v3523_v12, %v4751_v27 }
 0x300   : > { %v2505_v60 = vadd.f32 %v4756_v59, %v2482_v17  ;;  %v2520_v23 = vmax.f32 %v2504_v15, 0.0 }
 0x301   : > { %v2503_v21 = vadd.f32 %v4756_v59, %v2480_v19  ;;  %v2518_v48 = vmax.f32 %v2502_v9, 0.0  ;;  %v3187_v9 = vld [vmem:[%s4800_s30] sm:$0xff]  }
 0x302   : > { %v2521_v24 = vmax.f32 %v2505_v60, 0.0  ;;  %v4812_v60 = vld [vmem:[%s4935_s9] ss:$0 sm:$0xff] }
 0x303   : > { %v2519_v26 = vmax.f32 %v2503_v21, 0.0 }
 0x304   : > { %v2533_v8 = vpack.c.bf16 %v2521_v24, %v2520_v23 }
 0x305   : > { %v2532_v30 = vpack.c.bf16 %v2519_v26, %v2518_v48  ;;  %v3188_v48 = vunpack.c.l.bf16 %v3187_v9 }
 0x307   : > { %3488 = vmatprep.mubr.msk.bf16.mxu1 %vm1107_vm2, %v2532_v30 }
 0x308   : > { %3489 = vmatmul.mubr.msk.bf16.gmra.mrb[20].mxu1 %vm1107_vm2, %v2533_v8 }
 0x313   : > { %v3474_v57 = vpop.f32.mrb[8].mxu0 }
 0x314   : > { %v2421_v13 = vpop.f32.mrb[9].mxu0 }
 0x315   : > { %v3418_v35 = vpop.f32.mrb[8].mxu1  ;;  %v3475_v55 = vpop.f32.mrb[10].mxu0 }
 0x316   : > { %v3524_v49 = vadd.f32 %v3474_v57, %v3418_v35  ;;  %v1754_v39 = vpop.f32.mrb[9].mxu1  ;;  %v2424_v45 = vpop.f32.mrb[11].mxu0 }
 0x317   : > { %v3525_v40 = vadd.f32 %v2421_v13, %v1754_v39  ;;  %v3419_v41 = vpop.f32.mrb[10].mxu1  ;;  %v3189_v39 = vunpack.c.h.bf16 %v3187_v9 }
 0x318   : > { %v2485_v0 = vmul.f32 %v3524_v49, %v4751_v27  ;;  %v3526_v5 = vadd.f32 %v3475_v55, %v3419_v41  ;;  %v1757_v3 = vpop.f32.mrb[11].mxu1 }
 0x319   : > { %v2483_v36 = vmul.f32 %v3525_v40, %v4751_v27  ;;  %v3527_v33 = vadd.f32 %v2424_v45, %v1757_v3 }
 0x31a   : > { %v2508_v34 = vadd.f32 %v4756_v59, %v2485_v0  ;;  %v2486_v37 = vmul.f32 %v3526_v5, %v4751_v27 }
 0x31b   : > { %v2506_v46 = vadd.f32 %v4756_v59, %v2483_v36  ;;  %v2484_v20 = vmul.f32 %v3527_v33, %v4751_v27 }
 0x31c   : > { %v2509_v52 = vadd.f32 %v4756_v59, %v2486_v37  ;;  %v2524_v14 = vmax.f32 %v2508_v34, 0.0 }
 0x31d   : > { %v2507_v1 = vadd.f32 %v4756_v59, %v2484_v20  ;;  %v2522_v11 = vmax.f32 %v2506_v46, 0.0 }
 0x31e   : > { %v2525_v51 = vmax.f32 %v2509_v52, 0.0  ;;  %v3260_v52 = vld [vmem:[%s4800_s30 + $0x18] sm:$0xff]  }
 0x31f   : > { %v2523_v53 = vmax.f32 %v2507_v1, 0.0  ;;  %v3259_v1 = vld [vmem:[%s4800_s30 + $0x10] sm:$0xff]  }
 0x320   : > { %v2535_v18 = vpack.c.bf16 %v2525_v51, %v2524_v14  ;;  %v3200_v51 = vunpack.c.l.bf16 %v3260_v52 }
 0x321   : > { %v2534_v28 = vpack.c.bf16 %v2523_v53, %v2522_v11 }
 0x323   : > { %3492 = vmatprep.mubr.msk.bf16.mxu1 %vm1107_vm2, %v2534_v28 }
 0x324   : > { %3493 = vmatmul.mubr.msk.bf16.gmra.mrb[24].mxu1 %vm1107_vm2, %v2535_v18  ;;  %v3196_v18 = vunpack.c.l.bf16 %v3259_v1 }
 0x32f   : > { %v3478_v54 = vpop.f32.mrb[12].mxu0 }
 0x330   : > { %v2437_v44 = vpop.f32.mrb[13].mxu0 }
 0x331   : > { %v3422_v2 = vpop.f32.mrb[12].mxu1  ;;  %v3479_v50 = vpop.f32.mrb[14].mxu0 }
 0x332   : > { %v3528_v7 = vadd.f32 %v3478_v54, %v3422_v2  ;;  %v1770_v16 = vpop.f32.mrb[13].mxu1  ;;  %v2440_v38 = vpop.f32.mrb[15].mxu0 }
 0x333   : > { %v3529_v31 = vadd.f32 %v2437_v44, %v1770_v16  ;;  %v3423_v32 = vpop.f32.mrb[14].mxu1  ;;  %v3201_v44 = vunpack.c.h.bf16 %v3260_v52 }
 0x334   : > { %v2489_v29 = vmul.f32 %v3528_v7, %v4751_v27  ;;  %v3530_v61 = vadd.f32 %v3479_v50, %v3423_v32  ;;  %v1773_v47 = vpop.f32.mrb[15].mxu1 }
 0x335   : > { %v2487_v58 = vmul.f32 %v3529_v31, %v4751_v27  ;;  %v3531_v42 = vadd.f32 %v2440_v38, %v1773_v47  ;;  %v3197_v31 = vunpack.c.h.bf16 %v3259_v1 }
 0x336   : > { %v2512_v62 = vadd.f32 %v4756_v59, %v2489_v29  ;;  %v2490_v43 = vmul.f32 %v3530_v61, %v4751_v27 }
 0x337   : > { %v2510_v63 = vadd.f32 %v4756_v59, %v2487_v58  ;;  %v2488_v25 = vmul.f32 %v3531_v42, %v4751_v27  ;;  %v3258_v27 = vld [vmem:[%s4800_s30 + $0x8] sm:$0xff]  }
 0x338   : > { %v2513_v4 = vadd.f32 %v4756_v59, %v2490_v43  ;;  %v2528_v6 = vmax.f32 %v2512_v62, 0.0  ;;  %v3192_v21 = vunpack.c.l.bf16 %v3258_v27  ;;  %v3193_v57 = vunpack.c.h.bf16 %v3258_v27 }
 0x339   : > { %v2511_v22 = vadd.f32 %v4756_v59, %v2488_v25  ;;  %v2526_v56 = vmax.f32 %v2510_v63, 0.0  ;;  %v4806_v59 = vld [vmem:[%s4934_s8] ss:$0 sm:$0xff] }
 0x33a   : > { %v2529_v10 = vmax.f32 %v2513_v4, 0.0 }
 0x33b   : > { %v2527_v12 = vmax.f32 %v2511_v22, 0.0 }
 0x33c   : > { %v2537_v15 = vpack.c.bf16 %v2529_v10, %v2528_v6  ;;  %v3262_v6 = vld [vmem:[%s4800_s30 + $0x28] sm:$0xff]   ;;  %v3261_v10 = vld [vmem:[%s4800_s30 + $0x20] sm:$0xff]  }
 0x33d   : > { %v2536_v17 = vpack.c.bf16 %v2527_v12, %v2526_v56  ;;  %v3208_v12 = vunpack.c.l.bf16 %v3262_v6  ;;  %v3204_v27 = vunpack.c.l.bf16 %v3261_v10 }
 0x33f   : > { %3496 = vmatprep.mubr.msk.bf16.mxu1 %vm1107_vm2, %v2536_v17 }
 0x340   : > { %3497 = vmatmul.mubr.msk.bf16.gmra.mrb[28].mxu1 %vm1107_vm2, %v2537_v15 }
 0x3bf   : > { %v3486_v19 = vpop.f32.mrb[16].mxu1 }
 0x3c0   : > { %v2721_v23 = vmul.f32 %v3486_v19, %v4806_v59  ;;  %v2612_v24 = vpop.f32.mrb[17].mxu1 }
 0x3c1   : > { %v2719_v26 = vmul.f32 %v4806_v59, %v2612_v24  ;;  %v3487_v8 = vpop.f32.mrb[18].mxu1 }
 0x3c2   : > { %v2744_v30 = vadd.f32 %v4812_v60, %v2721_v23  ;;  %v2722_v35 = vmul.f32 %v3487_v8, %v4806_v59  ;;  %v2615_v13 = vpop.f32.mrb[19].mxu1  ;;  %v3209_v23 = vunpack.c.h.bf16 %v3262_v6  ;;  %v3205_v8 = vunpack.c.h.bf16 %v3261_v10 }
 0x3c3   : > { %v2742_v49 = vadd.f32 %v4812_v60, %v2719_v26  ;;  %v2720_v55 = vmul.f32 %v4806_v59, %v2615_v13 }
 0x3c4   : > { %v2760_v40 = vadd.f32 %v3192_v21, %v2744_v30  ;;  %v2745_v41 = vadd.f32 %v4812_v60, %v2722_v35 }
 0x3c5   : > { %v2758_v45 = vadd.f32 %v3188_v48, %v2742_v49  ;;  %v2743_v0 = vadd.f32 %v4812_v60, %v2720_v55 }
 0x3c6   : > { %v2761_v5 = vadd.f32 %v3193_v57, %v2745_v41  ;;  %v2776_v36 = vmax.f32 %v2760_v40, 0.0 }
 0x3c7   : > { %v2759_v3 = vadd.f32 %v3189_v39, %v2743_v0  ;;  %v2774_v34 = vmax.f32 %v2758_v45, 0.0 }
 0x3c8   : > { %v2777_v33 = vmax.f32 %v2761_v5, 0.0 }
 0x3c9   : > { %v2775_v37 = vmax.f32 %v2759_v3, 0.0 }
 0x3ca   : > { %v3226_v46 = vpack.c.bf16 %v2777_v33, %v2776_v36  ;;  %v3264_v36 = vld [vmem:[%s4800_s30 + $0x38] sm:$0xff]   ;;  %v3263_v33 = vld [vmem:[%s4800_s30 + $0x30] sm:$0xff]  }
 0x3cb   : > { %v3221_v20 = vpack.c.bf16 %v2775_v37, %v2774_v34  ;;  %v3216_v37 = vunpack.c.l.bf16 %v3264_v36  ;;  %v3212_v52 = vunpack.c.l.bf16 %v3263_v33 }
 0x3cc   : > { %3265 = vst [vmem:[%s3967_s25 + $0x8] sm:$0xff] %v3226_v46  }
 0x3cd   : > { %3222 = vst [vmem:[%s3967_s25] sm:$0xff] %v3221_v20  }
 0x3db   : > { %v3490_v14 = vpop.f32.mrb[20].mxu1 }
 0x3dc   : > { %v2725_v11 = vmul.f32 %v3490_v14, %v4806_v59  ;;  %v2628_v53 = vpop.f32.mrb[21].mxu1 }
 0x3dd   : > { %v2723_v28 = vmul.f32 %v4806_v59, %v2628_v53  ;;  %v3491_v54 = vpop.f32.mrb[22].mxu1 }
 0x3de   : > { %v2748_v2 = vadd.f32 %v4812_v60, %v2725_v11  ;;  %v2726_v7 = vmul.f32 %v3491_v54, %v4806_v59  ;;  %v2631_v16 = vpop.f32.mrb[23].mxu1  ;;  %v3217_v11 = vunpack.c.h.bf16 %v3264_v36  ;;  %v3213_v54 = vunpack.c.h.bf16 %v3263_v33 }
 0x3df   : > { %v2746_v50 = vadd.f32 %v4812_v60, %v2723_v28  ;;  %v2724_v32 = vmul.f32 %v4806_v59, %v2631_v16 }
 0x3e0   : > { %v2764_v38 = vadd.f32 %v3200_v51, %v2748_v2  ;;  %v2749_v29 = vadd.f32 %v4812_v60, %v2726_v7 }
 0x3e1   : > { %v2762_v61 = vadd.f32 %v3196_v18, %v2746_v50  ;;  %v2747_v47 = vadd.f32 %v4812_v60, %v2724_v32 }
 0x3e2   : > { %v2765_v58 = vadd.f32 %v3201_v44, %v2749_v29  ;;  %v2780_v62 = vmax.f32 %v2764_v38, 0.0 }
 0x3e3   : > { %v2763_v42 = vadd.f32 %v3197_v31, %v2747_v47  ;;  %v2778_v63 = vmax.f32 %v2762_v61, 0.0 }
 0x3e4   : > { %v2781_v43 = vmax.f32 %v2765_v58, 0.0 }
 0x3e5   : > { %v2779_v25 = vmax.f32 %v2763_v42, 0.0 }
 0x3e6   : > { %v3236_v4 = vpack.c.bf16 %v2781_v43, %v2780_v62 }
 0x3e7   : > { %v3231_v22 = vpack.c.bf16 %v2779_v25, %v2778_v63 }
 0x3e8   : > { %3267 = vst [vmem:[%s3967_s25 + $0x18] sm:$0xff] %v3236_v4  }
 0x3e9   : > { %3266 = vst [vmem:[%s3967_s25 + $0x10] sm:$0xff] %v3231_v22  }
 0x3f7   : > { %v3494_v56 = vpop.f32.mrb[24].mxu1 }
 0x3f8   : > { %v2729_v15 = vmul.f32 %v3494_v56, %v4806_v59  ;;  %v2644_v17 = vpop.f32.mrb[25].mxu1 }
 0x3f9   : > { %v2727_v9 = vmul.f32 %v4806_v59, %v2644_v17  ;;  %v3495_v19 = vpop.f32.mrb[26].mxu1 }
 0x3fa   : > { %v2752_v21 = vadd.f32 %v4812_v60, %v2729_v15  ;;  %v2730_v24 = vmul.f32 %v3495_v19, %v4806_v59  ;;  %v2647_v48 = vpop.f32.mrb[27].mxu1 }
 0x3fb   : > { %v2750_v26 = vadd.f32 %v4812_v60, %v2727_v9  ;;  %v2728_v30 = vmul.f32 %v4806_v59, %v2647_v48 }
 0x3fc   : > { %v2768_v57 = vadd.f32 %v3208_v12, %v2752_v21  ;;  %v2753_v35 = vadd.f32 %v4812_v60, %v2730_v24 }
 0x3fd   : > { %v2766_v13 = vadd.f32 %v3204_v27, %v2750_v26  ;;  %v2751_v49 = vadd.f32 %v4812_v60, %v2728_v30 }
 0x3fe   : > { %v2769_v39 = vadd.f32 %v3209_v23, %v2753_v35  ;;  %v2784_v40 = vmax.f32 %v2768_v57, 0.0 }
 0x3ff   : > { %v2767_v55 = vadd.f32 %v3205_v8, %v2751_v49  ;;  %v2782_v45 = vmax.f32 %v2766_v13, 0.0 }
 0x400   : > { %v2785_v41 = vmax.f32 %v2769_v39, 0.0 }
 0x401   : > { %v2783_v0 = vmax.f32 %v2767_v55, 0.0 }
 0x402   : > { %v3246_v5 = vpack.c.bf16 %v2785_v41, %v2784_v40 }
 0x403   : > { %v3241_v3 = vpack.c.bf16 %v2783_v0, %v2782_v45 }
 0x404   : > { %3269 = vst [vmem:[%s3967_s25 + $0x28] sm:$0xff] %v3246_v5  }
 0x405   : > { %3268 = vst [vmem:[%s3967_s25 + $0x20] sm:$0xff] %v3241_v3  }
 0x413   : > { %v3498_v34 = vpop.f32.mrb[28].mxu1 }
 0x414   : > { %v2733_v46 = vmul.f32 %v3498_v34, %v4806_v59  ;;  %v2660_v20 = vpop.f32.mrb[29].mxu1 }
 0x415   : > { %v2731_v1 = vmul.f32 %v4806_v59, %v2660_v20  ;;  %v3499_v14 = vpop.f32.mrb[30].mxu1 }
 0x416   : > { %v2756_v51 = vadd.f32 %v4812_v60, %v2733_v46  ;;  %v2734_v53 = vmul.f32 %v3499_v14, %v4806_v59  ;;  %v2663_v18 = vpop.f32.mrb[31].mxu1 }
 0x417   : > { %v2754_v28 = vadd.f32 %v4812_v60, %v2731_v1  ;;  %v2732_v2 = vmul.f32 %v4806_v59, %v2663_v18 }
 0x418   : > { %v2772_v44 = vadd.f32 %v3216_v37, %v2756_v51  ;;  %v2757_v7 = vadd.f32 %v4812_v60, %v2734_v53 }
 0x419   : > { %v2770_v16 = vadd.f32 %v3212_v52, %v2754_v28  ;;  %v2755_v50 = vadd.f32 %v4812_v60, %v2732_v2 }
 0x41a   : > { %v2773_v31 = vadd.f32 %v3217_v11, %v2757_v7  ;;  %v2788_v38 = vmax.f32 %v2772_v44, 0.0 }
 0x41b   : > { %v2771_v32 = vadd.f32 %v3213_v54, %v2755_v50  ;;  %v2786_v61 = vmax.f32 %v2770_v16, 0.0 }
 0x41c   : > { %v2789_v29 = vmax.f32 %v2773_v31, 0.0 }
 0x41d   : > { %v2787_v47 = vmax.f32 %v2771_v32, 0.0 }
 0x41e   : > { %v3256_v59 = vpack.c.bf16 %v2789_v29, %v2788_v38 }
 0x41f   : > { %v3251_v58 = vpack.c.bf16 %v2787_v47, %v2786_v61 }
 0x420   : > { %3271 = vst [vmem:[%s3967_s25 + $0x38] sm:$0xff] %v3256_v59  }
 0x421   : > { %3270 = vst [vmem:[%s3967_s25 + $0x30] sm:$0xff] %v3251_v58  }
 0x422   : > { %3743 = shalt.err (!%p3740_p7)
}
 0x423   : > { %s3744_s25 = scalar_lea.hbm %s4864_s23, 1024  ;;  %s3748_s30 = scalar_lea.hbm %s4936_s10, 4096 }
 0x424   : > { %p3745_p9 = scmp.ne.s32.totalorder %s4864_s23, %s3744_s25  ;;  %p3749_p12 = scmp.lt.u32.totalorder %s4864_s23, %s4936_s10 }
 0x425   : > { %p3750_p13 = scmp.lt.u32.totalorder %s3748_s30, %s3744_s25  ;;  %p3752_p1 = scmp.lt.u32.totalorder %s3744_s25, %s4864_s23 }
 0x426   : > { %p3746_p10 = pnand %p3745_p9, %p3937_p3 }
 0x427   : > { %p3751_p0 = por %p3750_p13, %p3749_p12 }
 0x428   : > { %p3747_p11 = pneg %p3746_p10 }
 0x429   : > { %p3753_p2 = por %p3752_p1, %p3751_p0 }
 0x42b   : > { %p3754_p4 = pnand %p3753_p2, %p3747_p11 }
 0x42d   : > { %3757 = shalt.err (!%p3754_p4)
}
 0x42e   : > { %s3830_s12 = smov 4  }
 0x42f   : > { %3548 = dma.vmem_to_hbm [thread:$0]  (%p3937_p3), %s4866_s17, 1024, %s4864_s23, %s4872_s21, %s3827_s28, %s3827_s28, %s3830_s12  }
 0x430 PF: > { %p3554_p5 = scmp.ge.s32.totalorder %s3824_s20, 2  ;;  %s2901_s18 = sand.u32 1, %s3796_s13  }
 0x431   : > { %s2902_s25 = scalar_lea.sflag [#allocation4], %s2901_s18 }
 0x432   : > { %p3551_p6 = pnand %p3554_p5, %p3946_p8 }
 0x434   : > { %3791 = dma.done.wait (!%p3551_p6), %s2902_s25, 1024  }
 0x435   : > { %3793 = vsyncadd (!%p3551_p6), %s2902_s25, 4294966272  ;;  %s23_s20 = sadd.s32 1, %s3824_s20   ;;  %s4950_s16 = sld [smem:[#allocation6_spill]] }
 0x436   : > { %p20_p7 = scmp.ge.s32.totalorder %s23_s20, 6   ;;  %s4951_s18 = sld [smem:[#allocation7_spill]] }
 0x437   : > { %s4952_s26 = sld [smem:[#allocation8_spill]]  ;;  %s4953_s13 = smov %s3800_s14 }
 0x438   : > { %s4954_s14 = smov %s3804_s15  ;;  %s4955_s15 = smov %s3955_s11 }
 0x439   : > { %s4956_s17 = smov %s3820_s19  ;;  %22 = sbr.rel (!%p20_p7) target bundleno = 5 (0x5), region = 107 }
 0x43d   : > { %s4957_s19 = smov %s4952_s26 }
 0x440   :  { %2907 = vsyncpa [#allocation4], 1 }
 0x441   :  { %2909 = vsyncpa [#allocation4 + $0x1], 1 }

</bundles_post_ra>
